<compile_context>
chip_gen: v6e
topology: v6e:2x2x1
jax: 0.10.0
libtpu: 0.0.40
codegen_flags: <defaults>
</compile_context>

<pallas_src>
import functools
import math

import jax
import jax.numpy as jnp
from jax.experimental import pallas as pl
from jax.experimental.pallas import tpu as pltpu


# ---------------------------------------------------------------------------
# helpers
# ---------------------------------------------------------------------------
def _gelu_tanh(x):
    c = math.sqrt(2.0 / math.pi)
    return 0.5 * x * (1.0 + jnp.tanh(c * (x + 0.044715 * x * x * x)))


def prepare_layer_params(p, heads, dim_head):
    """One-time weight prep (outside the per-forward path).

    Splits q/k/v/out projections head-major so the kernel indexes heads along
    the leading (major) axis, and reshapes biases / LN params to 2-D.
    """
    D = p["wq"].shape[0]

    def split_in(w):  # (D, heads*dh) -> (heads, D, dh)
        return jnp.transpose(w.reshape(D, heads, dim_head), (1, 0, 2))

    return dict(
        ln1_g=p["ln1_g"].reshape(1, -1),
        ln1_b=p["ln1_b"].reshape(1, -1),
        wq=split_in(p["wq"]),
        wk=split_in(p["wk"]),
        wv=split_in(p["wv"]),
        wo=p["wo"].reshape(heads, dim_head, D),   # (heads*dh, D) -> (heads, dh, D)
        bo=p["bo"].reshape(1, -1),
        ln2_g=p["ln2_g"].reshape(1, -1),
        ln2_b=p["ln2_b"].reshape(1, -1),
        w1=p["w1"],
        b1=p["b1"].reshape(1, -1),
        w2=p["w2"],
        b2=p["b2"].reshape(1, -1),
    )


# ---------------------------------------------------------------------------
# Fused decoder-layer kernel: one grid step == one batch element, whole layer
# ---------------------------------------------------------------------------
def _decoder_layer_kernel(x_ref, m_ref,
                          ln1_g_ref, ln1_b_ref,
                          wq_ref, wk_ref, wv_ref, wo_ref, bo_ref,
                          ln2_g_ref, ln2_b_ref,
                          w1_ref, b1_ref, w2_ref, b2_ref,
                          o_ref, *, heads, scale, use_softmax, eps):
    f32 = jnp.float32
    x = x_ref[0].astype(f32)   # (n, D)  query / target
    m = m_ref[0].astype(f32)   # (j, D)  memory

    def layer_norm(t, g_ref, b_ref):
        mu = jnp.mean(t, axis=-1, keepdims=True)
        tc = t - mu
        var = jnp.mean(tc * tc, axis=-1, keepdims=True)
        return (tc * jax.lax.rsqrt(var + eps) * g_ref[...].astype(f32)
                + b_ref[...].astype(f32))

    # PreNorm2: LN1 shared between x and m.
    nx = layer_norm(x, ln1_g_ref, ln1_b_ref)   # (n, D)
    nm = layer_norm(m, ln1_g_ref, ln1_b_ref)   # (j, D)

    # Cross-attention + out-projection + residual, accumulated per head.
    # x + (concat_h(oh) @ wo + bo)  ==  x + bo + sum_h oh @ wo_h
    acc = x + bo_ref[...].astype(f32)          # (n, D)
    for h in range(heads):                     # static unroll, heads is small
        qh = jnp.dot(nx, wq_ref[h].astype(f32),
                     preferred_element_type=f32) * scale        # (n, dh)
        kh = jnp.dot(nm, wk_ref[h].astype(f32),
                     preferred_element_type=f32)                 # (j, dh)
        vh = jnp.dot(nm, wv_ref[h].astype(f32),
                     preferred_element_type=f32)                 # (j, dh)
        s = jax.lax.dot_general(qh, kh, (((1,), (1,)), ((), ())),
                                preferred_element_type=f32)      # (n, j)
        if use_softmax:
            s = s - jnp.max(s, axis=-1, keepdims=True)
            p = jnp.exp(s)
            p = p * pl.reciprocal(jnp.sum(p, axis=-1, keepdims=True),
                                  approx=True)
        else:
            p = s
        oh = jnp.dot(p, vh, preferred_element_type=f32)          # (n, dh)
        acc = acc + jnp.dot(oh, wo_ref[h].astype(f32),
                            preferred_element_type=f32)          # (n, D)

    # Residual(PreNorm(FeedForward)); Dropout is identity in eval mode.
    nx2 = layer_norm(acc, ln2_g_ref, ln2_b_ref)                  # (n, D)
    hdn = (jnp.dot(nx2, w1_ref[...].astype(f32), preferred_element_type=f32)
           + b1_ref[...].astype(f32))                            # (n, mlp)
    hdn = _gelu_tanh(hdn)
    y = (jnp.dot(hdn, w2_ref[...].astype(f32), preferred_element_type=f32)
         + b2_ref[...].astype(f32))                              # (n, D)

    o_ref[0] = (acc + y).astype(o_ref.dtype)


def decoder_layer_pallas(x, m, p, use_softmax=True):
    """x: (B, n, D) query, m: (B, j, D) memory, p: prepped layer params."""
    B, n, D = x.shape
    _, j, _ = m.shape
    heads, _, dim_head = p["wq"].shape
    mlp = p["w1"].shape[1]
    scale = float(D) ** -0.5   # matches PyTorch: self.scale = dim ** (-0.5)

    z2 = lambda b: (0, 0)
    z3 = lambda b: (0, 0, 0)

    kernel = functools.partial(
        _decoder_layer_kernel, heads=heads, scale=scale,
        use_softmax=use_softmax, eps=1e-5)

    return pl.pallas_call(
        kernel,
        out_shape=jax.ShapeDtypeStruct((B, n, D), x.dtype),
        grid_spec=pltpu.PrefetchScalarGridSpec(
            num_scalar_prefetch=0,
            grid=(B,),
            in_specs=[
                pl.BlockSpec((1, n, D), lambda b: (b, 0, 0)),          # x
                pl.BlockSpec((1, j, D), lambda b: (b, 0, 0)),          # m
                pl.BlockSpec((1, D), z2),                              # ln1_g
                pl.BlockSpec((1, D), z2),                              # ln1_b
                pl.BlockSpec((heads, D, dim_head), z3),                # wq
                pl.BlockSpec((heads, D, dim_head), z3),                # wk
                pl.BlockSpec((heads, D, dim_head), z3),                # wv
                pl.BlockSpec((heads, dim_head, D), z3),                # wo
                pl.BlockSpec((1, D), z2),                              # bo
                pl.BlockSpec((1, D), z2),                              # ln2_g
                pl.BlockSpec((1, D), z2),                              # ln2_b
                pl.BlockSpec((D, mlp), z2),                            # w1
                pl.BlockSpec((1, mlp), z2),                            # b1
                pl.BlockSpec((mlp, D), z2),                            # w2
                pl.BlockSpec((1, D), z2),                              # b2
            ],
            out_specs=pl.BlockSpec((1, n, D), lambda b: (b, 0, 0)),
        ),
        compiler_params=pltpu.CompilerParams(
            dimension_semantics=("parallel",)),
    )(x, m,
      p["ln1_g"], p["ln1_b"],
      p["wq"], p["wk"], p["wv"], p["wo"], p["bo"],
      p["ln2_g"], p["ln2_b"],
      p["w1"], p["b1"], p["w2"], p["b2"])


def transformer_decoder_pallas(x, m, prepped_params, use_softmax=True):
    """x: (B, n, dim) target/query, m: (B, j, dim) memory.  mask=None path."""
    for p in prepped_params:
        x = decoder_layer_pallas(x, m, p, use_softmax=use_softmax)
    return x


# ---------------------------------------------------------------------------
# Pure-JAX reference (same math, no Pallas) for the correctness check
# ---------------------------------------------------------------------------
def _reference_decoder(x, m, params, heads, dim_head, use_softmax=True):
    def ln(t, g, b, eps=1e-5):
        mu = jnp.mean(t, axis=-1, keepdims=True)
        var = jnp.mean((t - mu) ** 2, axis=-1, keepdims=True)
        return (t - mu) * jax.lax.rsqrt(var + eps) * g + b

    for p in params:
        B, n, D = x.shape
        _, j, _ = m.shape
        nx = ln(x, p["ln1_g"], p["ln1_b"])
        nm = ln(m, p["ln1_g"], p["ln1_b"])
        q = (nx @ p["wq"]).reshape(B, n, heads, dim_head).transpose(0, 2, 1, 3)
        k = (nm @ p["wk"]).reshape(B, j, heads, dim_head).transpose(0, 2, 1, 3)
        v = (nm @ p["wv"]).reshape(B, j, heads, dim_head).transpose(0, 2, 1, 3)
        dots = jnp.einsum("bhid,bhjd->bhij", q, k) * (float(D) ** -0.5)
        attn = jax.nn.softmax(dots, axis=-1) if use_softmax else dots
        o = jnp.einsum("bhij,bhjd->bhid", attn, v)
        o = o.transpose(0, 2, 1, 3).reshape(B, n, heads * dim_head)
        x = x + (o @ p["wo"] + p["bo"])
        nx2 = ln(x, p["ln2_g"], p["ln2_b"])
        h = _gelu_tanh(nx2 @ p["w1"] + p["b1"])
        x = x + (h @ p["w2"] + p["b2"])
    return x


# ---------------------------------------------------------------------------
if __name__ == "__main__":
    # Small shapes consistent with the module: dim=32, depth=2, heads=4,
    # dim_head=8 (inner=32), mlp_dim=64, batch=2, query len 8, memory len 16.
    B, n_q, n_kv = 2, 8, 16
    dim, depth, heads, dim_head, mlp_dim = 32, 2, 4, 8, 64
    inner = heads * dim_head

    keys = iter(jax.random.split(jax.random.PRNGKey(0), 2 + depth * 13))
    x = jax.random.normal(next(keys), (B, n_q, dim), dtype=jnp.float32)
    m = jax.random.normal(next(keys), (B, n_kv, dim), dtype=jnp.float32)

    params = []
    for _ in range(depth):
        params.append(dict(
            ln1_g=1.0 + 0.05 * jax.random.normal(next(keys), (dim,), jnp.float32),
            ln1_b=0.05 * jax.random.normal(next(keys), (dim,), jnp.float32),
            wq=0.1 * jax.random.normal(next(keys), (dim, inner), jnp.float32),
            wk=0.1 * jax.random.normal(next(keys), (dim, inner), jnp.float32),
            wv=0.1 * jax.random.normal(next(keys), (dim, inner), jnp.float32),
            wo=0.1 * jax.random.normal(next(keys), (inner, dim), jnp.float32),
            bo=0.05 * jax.random.normal(next(keys), (dim,), jnp.float32),
            ln2_g=1.0 + 0.05 * jax.random.normal(next(keys), (dim,), jnp.float32),
            ln2_b=0.05 * jax.random.normal(next(keys), (dim,), jnp.float32),
            w1=0.1 * jax.random.normal(next(keys), (dim, mlp_dim), jnp.float32),
            b1=0.05 * jax.random.normal(next(keys), (mlp_dim,), jnp.float32),
            w2=0.1 * jax.random.normal(next(keys), (mlp_dim, dim), jnp.float32),
            b2=0.05 * jax.random.normal(next(keys), (dim,), jnp.float32),
        ))

    # One-time weight prep (head-major projection weights, 2-D biases).
    prepped = [prepare_layer_params(p, heads, dim_head) for p in params]

    out = jax.block_until_ready(
        transformer_decoder_pallas(x, m, prepped, use_softmax=True))
    assert out.shape == (B, n_q, dim)

    with jax.default_matmul_precision("highest"):
        ref = _reference_decoder(x, m, params, heads, dim_head, use_softmax=True)
    max_err = float(jnp.max(jnp.abs(out - ref)))
    assert jnp.allclose(out, ref, atol=2e-2, rtol=2e-2), f"max abs err {max_err}"

    print("KERNEL_OK")
</pallas_src>

<mosaic_0001>
module attributes {stable_mosaic.version = 11 : i64} {
  func.func @_decoder_layer_kernel(%arg0: i32, %arg1: memref<1x8x32xf32, #tpu.memory_space<vmem>>, %arg2: memref<1x16x32xf32, #tpu.memory_space<vmem>>, %arg3: memref<1x32xf32, #tpu.memory_space<vmem>>, %arg4: memref<1x32xf32, #tpu.memory_space<vmem>>, %arg5: memref<4x32x8xf32, #tpu.memory_space<vmem>>, %arg6: memref<4x32x8xf32, #tpu.memory_space<vmem>>, %arg7: memref<4x32x8xf32, #tpu.memory_space<vmem>>, %arg8: memref<4x8x32xf32, #tpu.memory_space<vmem>>, %arg9: memref<1x32xf32, #tpu.memory_space<vmem>>, %arg10: memref<1x32xf32, #tpu.memory_space<vmem>>, %arg11: memref<1x32xf32, #tpu.memory_space<vmem>>, %arg12: memref<32x64xf32, #tpu.memory_space<vmem>>, %arg13: memref<1x64xf32, #tpu.memory_space<vmem>>, %arg14: memref<64x32xf32, #tpu.memory_space<vmem>>, %arg15: memref<1x32xf32, #tpu.memory_space<vmem>>, %arg16: memref<1x8x32xf32, #tpu.memory_space<vmem>>) attributes {dimension_semantics = [#tpu.dimension_semantics<parallel>], iteration_bounds = array<i64: 2>, scalar_prefetch = 0 : i64, scratch_operands = 0 : i64, tpu.core_type = #tpu.core_type<tc>, window_params = [{transform_indices = @transform_0, window_bounds = array<i64: 1, 8, 32>}, {transform_indices = @transform_1, window_bounds = array<i64: 1, 16, 32>}, {pipeline_mode = #tpu.pipeline_mode<synchronous>, transform_indices = @transform_2, window_bounds = array<i64: 1, 32>}, {pipeline_mode = #tpu.pipeline_mode<synchronous>, transform_indices = @transform_3, window_bounds = array<i64: 1, 32>}, {pipeline_mode = #tpu.pipeline_mode<synchronous>, transform_indices = @transform_4, window_bounds = array<i64: 4, 32, 8>}, {pipeline_mode = #tpu.pipeline_mode<synchronous>, transform_indices = @transform_5, window_bounds = array<i64: 4, 32, 8>}, {pipeline_mode = #tpu.pipeline_mode<synchronous>, transform_indices = @transform_6, window_bounds = array<i64: 4, 32, 8>}, {pipeline_mode = #tpu.pipeline_mode<synchronous>, transform_indices = @transform_7, window_bounds = array<i64: 4, 8, 32>}, {pipeline_mode = #tpu.pipeline_mode<synchronous>, transform_indices = @transform_8, window_bounds = array<i64: 1, 32>}, {pipeline_mode = #tpu.pipeline_mode<synchronous>, transform_indices = @transform_9, window_bounds = array<i64: 1, 32>}, {pipeline_mode = #tpu.pipeline_mode<synchronous>, transform_indices = @transform_10, window_bounds = array<i64: 1, 32>}, {pipeline_mode = #tpu.pipeline_mode<synchronous>, transform_indices = @transform_11, window_bounds = array<i64: 32, 64>}, {pipeline_mode = #tpu.pipeline_mode<synchronous>, transform_indices = @transform_12, window_bounds = array<i64: 1, 64>}, {pipeline_mode = #tpu.pipeline_mode<synchronous>, transform_indices = @transform_13, window_bounds = array<i64: 64, 32>}, {pipeline_mode = #tpu.pipeline_mode<synchronous>, transform_indices = @transform_14, window_bounds = array<i64: 1, 32>}, {transform_indices = @transform_15, window_bounds = array<i64: 1, 8, 32>}]} {
    %c0 = arith.constant 0 : index
    %c0_0 = arith.constant 0 : index
    %c0_1 = arith.constant 0 : index
    %0 = vector.load %arg1[%c0, %c0_0, %c0_1] : memref<1x8x32xf32, #tpu.memory_space<vmem>>, vector<1x8x32xf32>
    %1 = vector.shape_cast %0 : vector<1x8x32xf32> to vector<8x32xf32>
    %c0_2 = arith.constant 0 : index
    %c0_3 = arith.constant 0 : index
    %c0_4 = arith.constant 0 : index
    %2 = vector.load %arg2[%c0_2, %c0_3, %c0_4] : memref<1x16x32xf32, #tpu.memory_space<vmem>>, vector<1x16x32xf32>
    %3 = vector.shape_cast %2 : vector<1x16x32xf32> to vector<16x32xf32>
    %cst = arith.constant dense<0.000000e+00> : vector<8xf32>
    %4 = vector.multi_reduction <add>, %1, %cst [1] : vector<8x32xf32> to vector<8xf32>
    %5 = vector.shape_cast %4 : vector<8xf32> to vector<8x1xf32>
    %cst_5 = arith.constant 3.200000e+01 : f32
    %6 = vector.broadcast %cst_5 : f32 to vector<8x1xf32>
    %7 = arith.divf %5, %6 : vector<8x1xf32>
    %8 = vector.broadcast %7 : vector<8x1xf32> to vector<8x32xf32>
    %9 = arith.subf %1, %8 : vector<8x32xf32>
    %10 = arith.mulf %9, %9 : vector<8x32xf32>
    %cst_6 = arith.constant dense<0.000000e+00> : vector<8xf32>
    %11 = vector.multi_reduction <add>, %10, %cst_6 [1] : vector<8x32xf32> to vector<8xf32>
    %12 = vector.shape_cast %11 : vector<8xf32> to vector<8x1xf32>
    %cst_7 = arith.constant 3.200000e+01 : f32
    %13 = vector.broadcast %cst_7 : f32 to vector<8x1xf32>
    %14 = arith.divf %12, %13 : vector<8x1xf32>
    %cst_8 = arith.constant 9.99999974E-6 : f32
    %15 = vector.broadcast %cst_8 : f32 to vector<8x1xf32>
    %16 = arith.addf %14, %15 : vector<8x1xf32>
    %17 = math.rsqrt %16 : vector<8x1xf32>
    %18 = vector.broadcast %17 : vector<8x1xf32> to vector<8x32xf32>
    %19 = arith.mulf %9, %18 : vector<8x32xf32>
    %c0_9 = arith.constant 0 : index
    %c0_10 = arith.constant 0 : index
    %20 = vector.load %arg3[%c0_9, %c0_10] : memref<1x32xf32, #tpu.memory_space<vmem>>, vector<1x32xf32>
    %21 = vector.broadcast %20 : vector<1x32xf32> to vector<8x32xf32>
    %22 = arith.mulf %19, %21 : vector<8x32xf32>
    %c0_11 = arith.constant 0 : index
    %c0_12 = arith.constant 0 : index
    %23 = vector.load %arg4[%c0_11, %c0_12] : memref<1x32xf32, #tpu.memory_space<vmem>>, vector<1x32xf32>
    %24 = vector.broadcast %23 : vector<1x32xf32> to vector<8x32xf32>
    %25 = arith.addf %22, %24 : vector<8x32xf32>
    %cst_13 = arith.constant dense<0.000000e+00> : vector<16xf32>
    %26 = vector.multi_reduction <add>, %3, %cst_13 [1] : vector<16x32xf32> to vector<16xf32>
    %27 = vector.shape_cast %26 : vector<16xf32> to vector<16x1xf32>
    %cst_14 = arith.constant 3.200000e+01 : f32
    %28 = vector.broadcast %cst_14 : f32 to vector<16x1xf32>
    %29 = arith.divf %27, %28 : vector<16x1xf32>
    %30 = vector.broadcast %29 : vector<16x1xf32> to vector<16x32xf32>
    %31 = arith.subf %3, %30 : vector<16x32xf32>
    %32 = arith.mulf %31, %31 : vector<16x32xf32>
    %cst_15 = arith.constant dense<0.000000e+00> : vector<16xf32>
    %33 = vector.multi_reduction <add>, %32, %cst_15 [1] : vector<16x32xf32> to vector<16xf32>
    %34 = vector.shape_cast %33 : vector<16xf32> to vector<16x1xf32>
    %cst_16 = arith.constant 3.200000e+01 : f32
    %35 = vector.broadcast %cst_16 : f32 to vector<16x1xf32>
    %36 = arith.divf %34, %35 : vector<16x1xf32>
    %cst_17 = arith.constant 9.99999974E-6 : f32
    %37 = vector.broadcast %cst_17 : f32 to vector<16x1xf32>
    %38 = arith.addf %36, %37 : vector<16x1xf32>
    %39 = math.rsqrt %38 : vector<16x1xf32>
    %40 = vector.broadcast %39 : vector<16x1xf32> to vector<16x32xf32>
    %41 = arith.mulf %31, %40 : vector<16x32xf32>
    %c0_18 = arith.constant 0 : index
    %c0_19 = arith.constant 0 : index
    %42 = vector.load %arg3[%c0_18, %c0_19] : memref<1x32xf32, #tpu.memory_space<vmem>>, vector<1x32xf32>
    %43 = vector.broadcast %42 : vector<1x32xf32> to vector<16x32xf32>
    %44 = arith.mulf %41, %43 : vector<16x32xf32>
    %c0_20 = arith.constant 0 : index
    %c0_21 = arith.constant 0 : index
    %45 = vector.load %arg4[%c0_20, %c0_21] : memref<1x32xf32, #tpu.memory_space<vmem>>, vector<1x32xf32>
    %46 = vector.broadcast %45 : vector<1x32xf32> to vector<16x32xf32>
    %47 = arith.addf %44, %46 : vector<16x32xf32>
    %c0_22 = arith.constant 0 : index
    %c0_23 = arith.constant 0 : index
    %48 = vector.load %arg9[%c0_22, %c0_23] : memref<1x32xf32, #tpu.memory_space<vmem>>, vector<1x32xf32>
    %49 = vector.broadcast %48 : vector<1x32xf32> to vector<8x32xf32>
    %50 = arith.addf %1, %49 : vector<8x32xf32>
    %c0_24 = arith.constant 0 : index
    %c0_25 = arith.constant 0 : index
    %c0_26 = arith.constant 0 : index
    %51 = vector.load %arg5[%c0_24, %c0_25, %c0_26] : memref<4x32x8xf32, #tpu.memory_space<vmem>>, vector<1x32x8xf32>
    %52 = vector.shape_cast %51 : vector<1x32x8xf32> to vector<32x8xf32>
    %cst_27 = arith.constant dense<0.000000e+00> : vector<8x8xf32>
    %53 = tpu.matmul %25, %52, %cst_27 {dimension_numbers = #tpu.dot_dimension_numbers<[1], [0], [0], [1], [0, 0, 1, 1], [], []>} : vector<8x32xf32>, vector<32x8xf32>, vector<8x8xf32> -> vector<8x8xf32>
    %cst_28 = arith.constant 0.176776692 : f32
    %54 = vector.broadcast %cst_28 : f32 to vector<8x8xf32>
    %55 = arith.mulf %53, %54 : vector<8x8xf32>
    %c0_29 = arith.constant 0 : index
    %c0_30 = arith.constant 0 : index
    %c0_31 = arith.constant 0 : index
    %56 = vector.load %arg6[%c0_29, %c0_30, %c0_31] : memref<4x32x8xf32, #tpu.memory_space<vmem>>, vector<1x32x8xf32>
    %57 = vector.shape_cast %56 : vector<1x32x8xf32> to vector<32x8xf32>
    %cst_32 = arith.constant dense<0.000000e+00> : vector<16x8xf32>
    %58 = tpu.matmul %47, %57, %cst_32 {dimension_numbers = #tpu.dot_dimension_numbers<[1], [0], [0], [1], [0, 0, 1, 1], [], []>} : vector<16x32xf32>, vector<32x8xf32>, vector<16x8xf32> -> vector<16x8xf32>
    %c0_33 = arith.constant 0 : index
    %c0_34 = arith.constant 0 : index
    %c0_35 = arith.constant 0 : index
    %59 = vector.load %arg7[%c0_33, %c0_34, %c0_35] : memref<4x32x8xf32, #tpu.memory_space<vmem>>, vector<1x32x8xf32>
    %60 = vector.shape_cast %59 : vector<1x32x8xf32> to vector<32x8xf32>
    %cst_36 = arith.constant dense<0.000000e+00> : vector<16x8xf32>
    %61 = tpu.matmul %47, %60, %cst_36 {dimension_numbers = #tpu.dot_dimension_numbers<[1], [0], [0], [1], [0, 0, 1, 1], [], []>} : vector<16x32xf32>, vector<32x8xf32>, vector<16x8xf32> -> vector<16x8xf32>
    %cst_37 = arith.constant dense<0.000000e+00> : vector<8x16xf32>
    %62 = tpu.matmul %55, %58, %cst_37 {dimension_numbers = #tpu.dot_dimension_numbers<[1], [1], [0], [0], [0, 0, 1, 0], [], []>} : vector<8x8xf32>, vector<16x8xf32>, vector<8x16xf32> -> vector<8x16xf32>
    %cst_38 = arith.constant dense<0xFF800000> : vector<8xf32>
    %63 = vector.multi_reduction <maximumf>, %62, %cst_38 [1] : vector<8x16xf32> to vector<8xf32>
    %64 = vector.shape_cast %63 : vector<8xf32> to vector<8x1xf32>
    %65 = vector.broadcast %64 : vector<8x1xf32> to vector<8x16xf32>
    %66 = arith.subf %62, %65 : vector<8x16xf32>
    %67 = math.exp %66 : vector<8x16xf32>
    %cst_39 = arith.constant dense<0.000000e+00> : vector<8xf32>
    %68 = vector.multi_reduction <add>, %67, %cst_39 [1] : vector<8x16xf32> to vector<8xf32>
    %69 = vector.shape_cast %68 : vector<8xf32> to vector<8x1xf32>
    %70 = tpu.reciprocal %69 {approx = true} : vector<8x1xf32> -> vector<8x1xf32>
    %71 = vector.broadcast %70 : vector<8x1xf32> to vector<8x16xf32>
    %72 = arith.mulf %67, %71 : vector<8x16xf32>
    %cst_40 = arith.constant dense<0.000000e+00> : vector<8x8xf32>
    %73 = tpu.matmul %72, %61, %cst_40 {dimension_numbers = #tpu.dot_dimension_numbers<[1], [0], [0], [1], [0, 0, 1, 1], [], []>} : vector<8x16xf32>, vector<16x8xf32>, vector<8x8xf32> -> vector<8x8xf32>
    %c0_41 = arith.constant 0 : index
    %c0_42 = arith.constant 0 : index
    %c0_43 = arith.constant 0 : index
    %74 = vector.load %arg8[%c0_41, %c0_42, %c0_43] : memref<4x8x32xf32, #tpu.memory_space<vmem>>, vector<1x8x32xf32>
    %75 = vector.shape_cast %74 : vector<1x8x32xf32> to vector<8x32xf32>
    %cst_44 = arith.constant dense<0.000000e+00> : vector<8x32xf32>
    %76 = tpu.matmul %73, %75, %cst_44 {dimension_numbers = #tpu.dot_dimension_numbers<[1], [0], [0], [1], [0, 0, 1, 1], [], []>} : vector<8x8xf32>, vector<8x32xf32>, vector<8x32xf32> -> vector<8x32xf32>
    %77 = arith.addf %50, %76 : vector<8x32xf32>
    %c1 = arith.constant 1 : index
    %c0_45 = arith.constant 0 : index
    %c0_46 = arith.constant 0 : index
    %78 = vector.load %arg5[%c1, %c0_45, %c0_46] : memref<4x32x8xf32, #tpu.memory_space<vmem>>, vector<1x32x8xf32>
    %79 = vector.shape_cast %78 : vector<1x32x8xf32> to vector<32x8xf32>
    %cst_47 = arith.constant dense<0.000000e+00> : vector<8x8xf32>
    %80 = tpu.matmul %25, %79, %cst_47 {dimension_numbers = #tpu.dot_dimension_numbers<[1], [0], [0], [1], [0, 0, 1, 1], [], []>} : vector<8x32xf32>, vector<32x8xf32>, vector<8x8xf32> -> vector<8x8xf32>
    %cst_48 = arith.constant 0.176776692 : f32
    %81 = vector.broadcast %cst_48 : f32 to vector<8x8xf32>
    %82 = arith.mulf %80, %81 : vector<8x8xf32>
    %c1_49 = arith.constant 1 : index
    %c0_50 = arith.constant 0 : index
    %c0_51 = arith.constant 0 : index
    %83 = vector.load %arg6[%c1_49, %c0_50, %c0_51] : memref<4x32x8xf32, #tpu.memory_space<vmem>>, vector<1x32x8xf32>
    %84 = vector.shape_cast %83 : vector<1x32x8xf32> to vector<32x8xf32>
    %cst_52 = arith.constant dense<0.000000e+00> : vector<16x8xf32>
    %85 = tpu.matmul %47, %84, %cst_52 {dimension_numbers = #tpu.dot_dimension_numbers<[1], [0], [0], [1], [0, 0, 1, 1], [], []>} : vector<16x32xf32>, vector<32x8xf32>, vector<16x8xf32> -> vector<16x8xf32>
    %c1_53 = arith.constant 1 : index
    %c0_54 = arith.constant 0 : index
    %c0_55 = arith.constant 0 : index
    %86 = vector.load %arg7[%c1_53, %c0_54, %c0_55] : memref<4x32x8xf32, #tpu.memory_space<vmem>>, vector<1x32x8xf32>
    %87 = vector.shape_cast %86 : vector<1x32x8xf32> to vector<32x8xf32>
    %cst_56 = arith.constant dense<0.000000e+00> : vector<16x8xf32>
    %88 = tpu.matmul %47, %87, %cst_56 {dimension_numbers = #tpu.dot_dimension_numbers<[1], [0], [0], [1], [0, 0, 1, 1], [], []>} : vector<16x32xf32>, vector<32x8xf32>, vector<16x8xf32> -> vector<16x8xf32>
    %cst_57 = arith.constant dense<0.000000e+00> : vector<8x16xf32>
    %89 = tpu.matmul %82, %85, %cst_57 {dimension_numbers = #tpu.dot_dimension_numbers<[1], [1], [0], [0], [0, 0, 1, 0], [], []>} : vector<8x8xf32>, vector<16x8xf32>, vector<8x16xf32> -> vector<8x16xf32>
    %cst_58 = arith.constant dense<0xFF800000> : vector<8xf32>
    %90 = vector.multi_reduction <maximumf>, %89, %cst_58 [1] : vector<8x16xf32> to vector<8xf32>
    %91 = vector.shape_cast %90 : vector<8xf32> to vector<8x1xf32>
    %92 = vector.broadcast %91 : vector<8x1xf32> to vector<8x16xf32>
    %93 = arith.subf %89, %92 : vector<8x16xf32>
    %94 = math.exp %93 : vector<8x16xf32>
    %cst_59 = arith.constant dense<0.000000e+00> : vector<8xf32>
    %95 = vector.multi_reduction <add>, %94, %cst_59 [1] : vector<8x16xf32> to vector<8xf32>
    %96 = vector.shape_cast %95 : vector<8xf32> to vector<8x1xf32>
    %97 = tpu.reciprocal %96 {approx = true} : vector<8x1xf32> -> vector<8x1xf32>
    %98 = vector.broadcast %97 : vector<8x1xf32> to vector<8x16xf32>
    %99 = arith.mulf %94, %98 : vector<8x16xf32>
    %cst_60 = arith.constant dense<0.000000e+00> : vector<8x8xf32>
    %100 = tpu.matmul %99, %88, %cst_60 {dimension_numbers = #tpu.dot_dimension_numbers<[1], [0], [0], [1], [0, 0, 1, 1], [], []>} : vector<8x16xf32>, vector<16x8xf32>, vector<8x8xf32> -> vector<8x8xf32>
    %c1_61 = arith.constant 1 : index
    %c0_62 = arith.constant 0 : index
    %c0_63 = arith.constant 0 : index
    %101 = vector.load %arg8[%c1_61, %c0_62, %c0_63] : memref<4x8x32xf32, #tpu.memory_space<vmem>>, vector<1x8x32xf32>
    %102 = vector.shape_cast %101 : vector<1x8x32xf32> to vector<8x32xf32>
    %cst_64 = arith.constant dense<0.000000e+00> : vector<8x32xf32>
    %103 = tpu.matmul %100, %102, %cst_64 {dimension_numbers = #tpu.dot_dimension_numbers<[1], [0], [0], [1], [0, 0, 1, 1], [], []>} : vector<8x8xf32>, vector<8x32xf32>, vector<8x32xf32> -> vector<8x32xf32>
    %104 = arith.addf %77, %103 : vector<8x32xf32>
    %c2 = arith.constant 2 : index
    %c0_65 = arith.constant 0 : index
    %c0_66 = arith.constant 0 : index
    %105 = vector.load %arg5[%c2, %c0_65, %c0_66] : memref<4x32x8xf32, #tpu.memory_space<vmem>>, vector<1x32x8xf32>
    %106 = vector.shape_cast %105 : vector<1x32x8xf32> to vector<32x8xf32>
    %cst_67 = arith.constant dense<0.000000e+00> : vector<8x8xf32>
    %107 = tpu.matmul %25, %106, %cst_67 {dimension_numbers = #tpu.dot_dimension_numbers<[1], [0], [0], [1], [0, 0, 1, 1], [], []>} : vector<8x32xf32>, vector<32x8xf32>, vector<8x8xf32> -> vector<8x8xf32>
    %cst_68 = arith.constant 0.176776692 : f32
    %108 = vector.broadcast %cst_68 : f32 to vector<8x8xf32>
    %109 = arith.mulf %107, %108 : vector<8x8xf32>
    %c2_69 = arith.constant 2 : index
    %c0_70 = arith.constant 0 : index
    %c0_71 = arith.constant 0 : index
    %110 = vector.load %arg6[%c2_69, %c0_70, %c0_71] : memref<4x32x8xf32, #tpu.memory_space<vmem>>, vector<1x32x8xf32>
    %111 = vector.shape_cast %110 : vector<1x32x8xf32> to vector<32x8xf32>
    %cst_72 = arith.constant dense<0.000000e+00> : vector<16x8xf32>
    %112 = tpu.matmul %47, %111, %cst_72 {dimension_numbers = #tpu.dot_dimension_numbers<[1], [0], [0], [1], [0, 0, 1, 1], [], []>} : vector<16x32xf32>, vector<32x8xf32>, vector<16x8xf32> -> vector<16x8xf32>
    %c2_73 = arith.constant 2 : index
    %c0_74 = arith.constant 0 : index
    %c0_75 = arith.constant 0 : index
    %113 = vector.load %arg7[%c2_73, %c0_74, %c0_75] : memref<4x32x8xf32, #tpu.memory_space<vmem>>, vector<1x32x8xf32>
    %114 = vector.shape_cast %113 : vector<1x32x8xf32> to vector<32x8xf32>
    %cst_76 = arith.constant dense<0.000000e+00> : vector<16x8xf32>
    %115 = tpu.matmul %47, %114, %cst_76 {dimension_numbers = #tpu.dot_dimension_numbers<[1], [0], [0], [1], [0, 0, 1, 1], [], []>} : vector<16x32xf32>, vector<32x8xf32>, vector<16x8xf32> -> vector<16x8xf32>
    %cst_77 = arith.constant dense<0.000000e+00> : vector<8x16xf32>
    %116 = tpu.matmul %109, %112, %cst_77 {dimension_numbers = #tpu.dot_dimension_numbers<[1], [1], [0], [0], [0, 0, 1, 0], [], []>} : vector<8x8xf32>, vector<16x8xf32>, vector<8x16xf32> -> vector<8x16xf32>
    %cst_78 = arith.constant dense<0xFF800000> : vector<8xf32>
    %117 = vector.multi_reduction <maximumf>, %116, %cst_78 [1] : vector<8x16xf32> to vector<8xf32>
    %118 = vector.shape_cast %117 : vector<8xf32> to vector<8x1xf32>
    %119 = vector.broadcast %118 : vector<8x1xf32> to vector<8x16xf32>
    %120 = arith.subf %116, %119 : vector<8x16xf32>
    %121 = math.exp %120 : vector<8x16xf32>
    %cst_79 = arith.constant dense<0.000000e+00> : vector<8xf32>
    %122 = vector.multi_reduction <add>, %121, %cst_79 [1] : vector<8x16xf32> to vector<8xf32>
    %123 = vector.shape_cast %122 : vector<8xf32> to vector<8x1xf32>
    %124 = tpu.reciprocal %123 {approx = true} : vector<8x1xf32> -> vector<8x1xf32>
    %125 = vector.broadcast %124 : vector<8x1xf32> to vector<8x16xf32>
    %126 = arith.mulf %121, %125 : vector<8x16xf32>
    %cst_80 = arith.constant dense<0.000000e+00> : vector<8x8xf32>
    %127 = tpu.matmul %126, %115, %cst_80 {dimension_numbers = #tpu.dot_dimension_numbers<[1], [0], [0], [1], [0, 0, 1, 1], [], []>} : vector<8x16xf32>, vector<16x8xf32>, vector<8x8xf32> -> vector<8x8xf32>
    %c2_81 = arith.constant 2 : index
    %c0_82 = arith.constant 0 : index
    %c0_83 = arith.constant 0 : index
    %128 = vector.load %arg8[%c2_81, %c0_82, %c0_83] : memref<4x8x32xf32, #tpu.memory_space<vmem>>, vector<1x8x32xf32>
    %129 = vector.shape_cast %128 : vector<1x8x32xf32> to vector<8x32xf32>
    %cst_84 = arith.constant dense<0.000000e+00> : vector<8x32xf32>
    %130 = tpu.matmul %127, %129, %cst_84 {dimension_numbers = #tpu.dot_dimension_numbers<[1], [0], [0], [1], [0, 0, 1, 1], [], []>} : vector<8x8xf32>, vector<8x32xf32>, vector<8x32xf32> -> vector<8x32xf32>
    %131 = arith.addf %104, %130 : vector<8x32xf32>
    %c3 = arith.constant 3 : index
    %c0_85 = arith.constant 0 : index
    %c0_86 = arith.constant 0 : index
    %132 = vector.load %arg5[%c3, %c0_85, %c0_86] : memref<4x32x8xf32, #tpu.memory_space<vmem>>, vector<1x32x8xf32>
    %133 = vector.shape_cast %132 : vector<1x32x8xf32> to vector<32x8xf32>
    %cst_87 = arith.constant dense<0.000000e+00> : vector<8x8xf32>
    %134 = tpu.matmul %25, %133, %cst_87 {dimension_numbers = #tpu.dot_dimension_numbers<[1], [0], [0], [1], [0, 0, 1, 1], [], []>} : vector<8x32xf32>, vector<32x8xf32>, vector<8x8xf32> -> vector<8x8xf32>
    %cst_88 = arith.constant 0.176776692 : f32
    %135 = vector.broadcast %cst_88 : f32 to vector<8x8xf32>
    %136 = arith.mulf %134, %135 : vector<8x8xf32>
    %c3_89 = arith.constant 3 : index
    %c0_90 = arith.constant 0 : index
    %c0_91 = arith.constant 0 : index
    %137 = vector.load %arg6[%c3_89, %c0_90, %c0_91] : memref<4x32x8xf32, #tpu.memory_space<vmem>>, vector<1x32x8xf32>
    %138 = vector.shape_cast %137 : vector<1x32x8xf32> to vector<32x8xf32>
    %cst_92 = arith.constant dense<0.000000e+00> : vector<16x8xf32>
    %139 = tpu.matmul %47, %138, %cst_92 {dimension_numbers = #tpu.dot_dimension_numbers<[1], [0], [0], [1], [0, 0, 1, 1], [], []>} : vector<16x32xf32>, vector<32x8xf32>, vector<16x8xf32> -> vector<16x8xf32>
    %c3_93 = arith.constant 3 : index
    %c0_94 = arith.constant 0 : index
    %c0_95 = arith.constant 0 : index
    %140 = vector.load %arg7[%c3_93, %c0_94, %c0_95] : memref<4x32x8xf32, #tpu.memory_space<vmem>>, vector<1x32x8xf32>
    %141 = vector.shape_cast %140 : vector<1x32x8xf32> to vector<32x8xf32>
    %cst_96 = arith.constant dense<0.000000e+00> : vector<16x8xf32>
    %142 = tpu.matmul %47, %141, %cst_96 {dimension_numbers = #tpu.dot_dimension_numbers<[1], [0], [0], [1], [0, 0, 1, 1], [], []>} : vector<16x32xf32>, vector<32x8xf32>, vector<16x8xf32> -> vector<16x8xf32>
    %cst_97 = arith.constant dense<0.000000e+00> : vector<8x16xf32>
    %143 = tpu.matmul %136, %139, %cst_97 {dimension_numbers = #tpu.dot_dimension_numbers<[1], [1], [0], [0], [0, 0, 1, 0], [], []>} : vector<8x8xf32>, vector<16x8xf32>, vector<8x16xf32> -> vector<8x16xf32>
    %cst_98 = arith.constant dense<0xFF800000> : vector<8xf32>
    %144 = vector.multi_reduction <maximumf>, %143, %cst_98 [1] : vector<8x16xf32> to vector<8xf32>
    %145 = vector.shape_cast %144 : vector<8xf32> to vector<8x1xf32>
    %146 = vector.broadcast %145 : vector<8x1xf32> to vector<8x16xf32>
    %147 = arith.subf %143, %146 : vector<8x16xf32>
    %148 = math.exp %147 : vector<8x16xf32>
    %cst_99 = arith.constant dense<0.000000e+00> : vector<8xf32>
    %149 = vector.multi_reduction <add>, %148, %cst_99 [1] : vector<8x16xf32> to vector<8xf32>
    %150 = vector.shape_cast %149 : vector<8xf32> to vector<8x1xf32>
    %151 = tpu.reciprocal %150 {approx = true} : vector<8x1xf32> -> vector<8x1xf32>
    %152 = vector.broadcast %151 : vector<8x1xf32> to vector<8x16xf32>
    %153 = arith.mulf %148, %152 : vector<8x16xf32>
    %cst_100 = arith.constant dense<0.000000e+00> : vector<8x8xf32>
    %154 = tpu.matmul %153, %142, %cst_100 {dimension_numbers = #tpu.dot_dimension_numbers<[1], [0], [0], [1], [0, 0, 1, 1], [], []>} : vector<8x16xf32>, vector<16x8xf32>, vector<8x8xf32> -> vector<8x8xf32>
    %c3_101 = arith.constant 3 : index
    %c0_102 = arith.constant 0 : index
    %c0_103 = arith.constant 0 : index
    %155 = vector.load %arg8[%c3_101, %c0_102, %c0_103] : memref<4x8x32xf32, #tpu.memory_space<vmem>>, vector<1x8x32xf32>
    %156 = vector.shape_cast %155 : vector<1x8x32xf32> to vector<8x32xf32>
    %cst_104 = arith.constant dense<0.000000e+00> : vector<8x32xf32>
    %157 = tpu.matmul %154, %156, %cst_104 {dimension_numbers = #tpu.dot_dimension_numbers<[1], [0], [0], [1], [0, 0, 1, 1], [], []>} : vector<8x8xf32>, vector<8x32xf32>, vector<8x32xf32> -> vector<8x32xf32>
    %158 = arith.addf %131, %157 : vector<8x32xf32>
    %cst_105 = arith.constant dense<0.000000e+00> : vector<8xf32>
    %159 = vector.multi_reduction <add>, %158, %cst_105 [1] : vector<8x32xf32> to vector<8xf32>
    %160 = vector.shape_cast %159 : vector<8xf32> to vector<8x1xf32>
    %cst_106 = arith.constant 3.200000e+01 : f32
    %161 = vector.broadcast %cst_106 : f32 to vector<8x1xf32>
    %162 = arith.divf %160, %161 : vector<8x1xf32>
    %163 = vector.broadcast %162 : vector<8x1xf32> to vector<8x32xf32>
    %164 = arith.subf %158, %163 : vector<8x32xf32>
    %165 = arith.mulf %164, %164 : vector<8x32xf32>
    %cst_107 = arith.constant dense<0.000000e+00> : vector<8xf32>
    %166 = vector.multi_reduction <add>, %165, %cst_107 [1] : vector<8x32xf32> to vector<8xf32>
    %167 = vector.shape_cast %166 : vector<8xf32> to vector<8x1xf32>
    %cst_108 = arith.constant 3.200000e+01 : f32
    %168 = vector.broadcast %cst_108 : f32 to vector<8x1xf32>
    %169 = arith.divf %167, %168 : vector<8x1xf32>
    %cst_109 = arith.constant 9.99999974E-6 : f32
    %170 = vector.broadcast %cst_109 : f32 to vector<8x1xf32>
    %171 = arith.addf %169, %170 : vector<8x1xf32>
    %172 = math.rsqrt %171 : vector<8x1xf32>
    %173 = vector.broadcast %172 : vector<8x1xf32> to vector<8x32xf32>
    %174 = arith.mulf %164, %173 : vector<8x32xf32>
    %c0_110 = arith.constant 0 : index
    %c0_111 = arith.constant 0 : index
    %175 = vector.load %arg10[%c0_110, %c0_111] : memref<1x32xf32, #tpu.memory_space<vmem>>, vector<1x32xf32>
    %176 = vector.broadcast %175 : vector<1x32xf32> to vector<8x32xf32>
    %177 = arith.mulf %174, %176 : vector<8x32xf32>
    %c0_112 = arith.constant 0 : index
    %c0_113 = arith.constant 0 : index
    %178 = vector.load %arg11[%c0_112, %c0_113] : memref<1x32xf32, #tpu.memory_space<vmem>>, vector<1x32xf32>
    %179 = vector.broadcast %178 : vector<1x32xf32> to vector<8x32xf32>
    %180 = arith.addf %177, %179 : vector<8x32xf32>
    %c0_114 = arith.constant 0 : index
    %c0_115 = arith.constant 0 : index
    %181 = vector.load %arg12[%c0_114, %c0_115] : memref<32x64xf32, #tpu.memory_space<vmem>>, vector<32x64xf32>
    %cst_116 = arith.constant dense<0.000000e+00> : vector<8x64xf32>
    %182 = tpu.matmul %180, %181, %cst_116 {dimension_numbers = #tpu.dot_dimension_numbers<[1], [0], [0], [1], [0, 0, 1, 1], [], []>} : vector<8x32xf32>, vector<32x64xf32>, vector<8x64xf32> -> vector<8x64xf32>
    %c0_117 = arith.constant 0 : index
    %c0_118 = arith.constant 0 : index
    %183 = vector.load %arg13[%c0_117, %c0_118] : memref<1x64xf32, #tpu.memory_space<vmem>>, vector<1x64xf32>
    %184 = vector.broadcast %183 : vector<1x64xf32> to vector<8x64xf32>
    %185 = arith.addf %182, %184 : vector<8x64xf32>
    %cst_119 = arith.constant 5.000000e-01 : f32
    %186 = vector.broadcast %cst_119 : f32 to vector<8x64xf32>
    %187 = arith.mulf %186, %185 : vector<8x64xf32>
    %cst_120 = arith.constant 4.471500e-02 : f32
    %188 = vector.broadcast %cst_120 : f32 to vector<8x64xf32>
    %189 = arith.mulf %188, %185 : vector<8x64xf32>
    %190 = arith.mulf %189, %185 : vector<8x64xf32>
    %191 = arith.mulf %190, %185 : vector<8x64xf32>
    %192 = arith.addf %185, %191 : vector<8x64xf32>
    %cst_121 = arith.constant 0.797884583 : f32
    %193 = vector.broadcast %cst_121 : f32 to vector<8x64xf32>
    %194 = arith.mulf %193, %192 : vector<8x64xf32>
    %195 = math.tanh %194 : vector<8x64xf32>
    %cst_122 = arith.constant 1.000000e+00 : f32
    %196 = vector.broadcast %cst_122 : f32 to vector<8x64xf32>
    %197 = arith.addf %196, %195 : vector<8x64xf32>
    %198 = arith.mulf %187, %197 : vector<8x64xf32>
    %c0_123 = arith.constant 0 : index
    %c0_124 = arith.constant 0 : index
    %199 = vector.load %arg14[%c0_123, %c0_124] : memref<64x32xf32, #tpu.memory_space<vmem>>, vector<64x32xf32>
    %cst_125 = arith.constant dense<0.000000e+00> : vector<8x32xf32>
    %200 = tpu.matmul %198, %199, %cst_125 {dimension_numbers = #tpu.dot_dimension_numbers<[1], [0], [0], [1], [0, 0, 1, 1], [], []>} : vector<8x64xf32>, vector<64x32xf32>, vector<8x32xf32> -> vector<8x32xf32>
    %c0_126 = arith.constant 0 : index
    %c0_127 = arith.constant 0 : index
    %201 = vector.load %arg15[%c0_126, %c0_127] : memref<1x32xf32, #tpu.memory_space<vmem>>, vector<1x32xf32>
    %202 = vector.broadcast %201 : vector<1x32xf32> to vector<8x32xf32>
    %203 = arith.addf %200, %202 : vector<8x32xf32>
    %204 = arith.addf %158, %203 : vector<8x32xf32>
    %c0_128 = arith.constant 0 : index
    %c0_129 = arith.constant 0 : index
    %c0_130 = arith.constant 0 : index
    %205 = vector.load %arg16[%c0_128, %c0_129, %c0_130] : memref<1x8x32xf32, #tpu.memory_space<vmem>>, vector<1x8x32xf32>
    %206 = vector.shape_cast %205 : vector<1x8x32xf32> to vector<8x32xf32>
    %207 = vector.shape_cast %204 : vector<8x32xf32> to vector<1x8x32xf32>
    tpu.vector_store %arg16[%c0_128, %c0_129, %c0_130], %207 {strides = array<i32>} : memref<1x8x32xf32, #tpu.memory_space<vmem>>, vector<1x8x32xf32>,
    return
  }
  func.func @transform_0(%arg0: i32) -> (i32, i32, i32) {
    %c0_i32 = arith.constant 0 : i32
    %c0_i32_0 = arith.constant 0 : i32
    %c0_i32_1 = arith.constant 0 : i32
    return %arg0, %c0_i32, %c0_i32_0 : i32, i32, i32
  }
  func.func @transform_1(%arg0: i32) -> (i32, i32, i32) {
    %c0_i32 = arith.constant 0 : i32
    %c0_i32_0 = arith.constant 0 : i32
    %c0_i32_1 = arith.constant 0 : i32
    return %arg0, %c0_i32, %c0_i32_0 : i32, i32, i32
  }
  func.func @transform_2(%arg0: i32) -> (i32, i32) {
    %c0_i32 = arith.constant 0 : i32
    %c0_i32_0 = arith.constant 0 : i32
    %c0_i32_1 = arith.constant 0 : i32
    return %c0_i32, %c0_i32_0 : i32, i32
  }
  func.func @transform_3(%arg0: i32) -> (i32, i32) {
    %c0_i32 = arith.constant 0 : i32
    %c0_i32_0 = arith.constant 0 : i32
    %c0_i32_1 = arith.constant 0 : i32
    return %c0_i32, %c0_i32_0 : i32, i32
  }
  func.func @transform_4(%arg0: i32) -> (i32, i32, i32) {
    %c0_i32 = arith.constant 0 : i32
    %c0_i32_0 = arith.constant 0 : i32
    %c0_i32_1 = arith.constant 0 : i32
    %c0_i32_2 = arith.constant 0 : i32
    return %c0_i32, %c0_i32_0, %c0_i32_1 : i32, i32, i32
  }
  func.func @transform_5(%arg0: i32) -> (i32, i32, i32) {
    %c0_i32 = arith.constant 0 : i32
    %c0_i32_0 = arith.constant 0 : i32
    %c0_i32_1 = arith.constant 0 : i32
    %c0_i32_2 = arith.constant 0 : i32
    return %c0_i32, %c0_i32_0, %c0_i32_1 : i32, i32, i32
  }
  func.func @transform_6(%arg0: i32) -> (i32, i32, i32) {
    %c0_i32 = arith.constant 0 : i32
    %c0_i32_0 = arith.constant 0 : i32
    %c0_i32_1 = arith.constant 0 : i32
    %c0_i32_2 = arith.constant 0 : i32
    return %c0_i32, %c0_i32_0, %c0_i32_1 : i32, i32, i32
  }
  func.func @transform_7(%arg0: i32) -> (i32, i32, i32) {
    %c0_i32 = arith.constant 0 : i32
    %c0_i32_0 = arith.constant 0 : i32
    %c0_i32_1 = arith.constant 0 : i32
    %c0_i32_2 = arith.constant 0 : i32
    return %c0_i32, %c0_i32_0, %c0_i32_1 : i32, i32, i32
  }
  func.func @transform_8(%arg0: i32) -> (i32, i32) {
    %c0_i32 = arith.constant 0 : i32
    %c0_i32_0 = arith.constant 0 : i32
    %c0_i32_1 = arith.constant 0 : i32
    return %c0_i32, %c0_i32_0 : i32, i32
  }
  func.func @transform_9(%arg0: i32) -> (i32, i32) {
    %c0_i32 = arith.constant 0 : i32
    %c0_i32_0 = arith.constant 0 : i32
    %c0_i32_1 = arith.constant 0 : i32
    return %c0_i32, %c0_i32_0 : i32, i32
  }
  func.func @transform_10(%arg0: i32) -> (i32, i32) {
    %c0_i32 = arith.constant 0 : i32
    %c0_i32_0 = arith.constant 0 : i32
    %c0_i32_1 = arith.constant 0 : i32
    return %c0_i32, %c0_i32_0 : i32, i32
  }
  func.func @transform_11(%arg0: i32) -> (i32, i32) {
    %c0_i32 = arith.constant 0 : i32
    %c0_i32_0 = arith.constant 0 : i32
    %c0_i32_1 = arith.constant 0 : i32
    return %c0_i32, %c0_i32_0 : i32, i32
  }
  func.func @transform_12(%arg0: i32) -> (i32, i32) {
    %c0_i32 = arith.constant 0 : i32
    %c0_i32_0 = arith.constant 0 : i32
    %c0_i32_1 = arith.constant 0 : i32
    return %c0_i32, %c0_i32_0 : i32, i32
  }
  func.func @transform_13(%arg0: i32) -> (i32, i32) {
    %c0_i32 = arith.constant 0 : i32
    %c0_i32_0 = arith.constant 0 : i32
    %c0_i32_1 = arith.constant 0 : i32
    return %c0_i32, %c0_i32_0 : i32, i32
  }
  func.func @transform_14(%arg0: i32) -> (i32, i32) {
    %c0_i32 = arith.constant 0 : i32
    %c0_i32_0 = arith.constant 0 : i32
    %c0_i32_1 = arith.constant 0 : i32
    return %c0_i32, %c0_i32_0 : i32, i32
  }
  func.func @transform_15(%arg0: i32) -> (i32, i32, i32) {
    %c0_i32 = arith.constant 0 : i32
    %c0_i32_0 = arith.constant 0 : i32
    %c0_i32_1 = arith.constant 0 : i32
    return %arg0, %c0_i32, %c0_i32_0 : i32, i32, i32
  }
}

</mosaic_0001>

<bundles_post_ra>
// kernel: tpu_custom_call.1
= control target key start
LH: loop header
LB: loop body
LE: loop exit
PB: predicated region body
PF: predicated region fallthrough
CT: control target
= control target key end

     0   :  { %s3944_s0 = inlined_call_operand.vmem [shape: f32[2,8,32], index: 0, kind: input, shape index: {}]   ;;  %s3945_s1 = inlined_call_operand.vmem [shape: f32[2,16,32], index: 1, kind: input, shape index: {}]   ;;  %s3946_s2 = inlined_call_operand.vmem [shape: f32[1,32], index: 2, kind: input, shape index: {}]   ;;  %s3947_s3 = inlined_call_operand.vmem [shape: f32[1,32], index: 3, kind: input, shape index: {}]   ;;  %s3948_s4 = inlined_call_operand.vmem [shape: f32[4,32,8], index: 4, kind: input, shape index: {}]   ;;  %s3949_s5 = inlined_call_operand.vmem [shape: f32[4,32,8], index: 5, kind: input, shape index: {}]   ;;  %s3950_s6 = inlined_call_operand.vmem [shape: f32[4,32,8], index: 6, kind: input, shape index: {}]   ;;  %s3951_s7 = inlined_call_operand.vmem [shape: f32[4,8,32], index: 7, kind: input, shape index: {}]   ;;  %s3952_s8 = inlined_call_operand.vmem [shape: f32[1,32], index: 8, kind: input, shape index: {}]   ;;  %s3953_s9 = inlined_call_operand.vmem [shape: f32[1,32], index: 9, kind: input, shape index: {}]   ;;  %s3954_s10 = inlined_call_operand.vmem [shape: f32[1,32], index: 10, kind: input, shape index: {}]   ;;  %s3955_s11 = inlined_call_operand.vmem [shape: f32[32,64], index: 11, kind: input, shape index: {}]   ;;  %s3956_s12 = inlined_call_operand.vmem [shape: f32[1,64], index: 12, kind: input, shape index: {}]   ;;  %s3957_s13 = inlined_call_operand.vmem [shape: f32[64,32], index: 13, kind: input, shape index: {}]   ;;  %s3958_s14 = inlined_call_operand.vmem [shape: f32[1,32], index: 14, kind: input, shape index: {}]   ;;  %s3959_s15 = inlined_call_operand.hbm [shape: f32[2,8,32], index: 15, kind: output, shape index: {}]  }
   0x1   :  { %3963 = sst [smem:[#allocation8_spill]] %s3944_s0 }
   0x2   :  { %3964 = sst [smem:[#allocation9_spill]] %s3945_s1 }
   0x3   :  { %3965 = sst [smem:[#allocation10_spill]] %s3946_s2 }
   0x4   :  { %20 = vsyncpa [#allocation3], 0 }
   0x5   :  { %22 = vsyncpa [#allocation3 + $0x1], 0  ;;  %s3452_s18 = smov 0   ;;  %s3454_s19 = smov 0  }
   0x6   :  { %s3456_s20 = smov 0   ;;  %s3458_s21 = smov 0  }
   0x7 LB: > { %3966 = sst [smem:[#allocation5_spill]] %s3363_s20  ;;  %s3473_s22 = sadd.s32 4294967295, %s3367_s21   ;;  %s3367_s21 = sphi %s3458_s21, %s3974_s21   ;;  %s3363_s20 = sphi %s3456_s20, %s3976_s20   ;;  %s3359_s19 = sphi %s3454_s19, %s3978_s19   ;;  %s3355_s18 = sphi %s3452_s18, %s3977_s18  }
   0x8   : > { %s2787_s23 = sadd.s32 4294967294, %s3367_s21   ;;  %s3477_s24 = sadd.s32 1, %s3367_s21  }
   0x9   : > { %3967 = sst [smem:[#allocation6_spill]] %s3477_s24  ;;  %s360_s25 = sadd.s32 1, %s3363_s20 }
   0xa   : > { %s357_s26 = ssub.s32 %s3367_s21, %s3477_s24  ;;  %p370_p0 = scmp.ne.s32.totalorder %s3363_s20, %s3359_s19 }
   0xb   : > { %p358_p1 = scmp.eq.s32.totalorder %s357_s26, 0  ;;  %p371_p2 = scmp.eq.s32.totalorder %s3473_s22, 1 }
   0xc   : > { %p376_p3 = scmp.ne.s32.totalorder %s3359_s19, %s3355_s18  ;;  %p377_p4 = scmp.eq.s32.totalorder %s2787_s23, 1 }
   0xd   : > { %s3488_s27 = scalar_select %p358_p1, %s3363_s20, %s360_s25  }
   0xe   : > { %p3490_p5 = por %p371_p2, %p370_p0  ;;  %p3494_p6 = por %p377_p4, %p376_p3 }
   0xf   : > { %3968 = sst [smem:[#allocation7_spill]] %s3488_s27  ;;  %p2790_p7 = scmp.ge.s32.totalorder %s3367_s21, 1 }
  0x10   : > { %p449_p8 = scmp.lt.s32.totalorder %s3367_s21, 3 }
  0x12   : > { %p450_p9 = pnand %p2790_p7, %p449_p8 }
  0x13   : > { %p501_p10 = scmp.lt.s32.totalorder (!%p450_p9), %s3473_s22, 1  ;;  %s3971_s1 = sld [smem:[#allocation9_spill]] (!%p450_p9) }
  0x14   : > { %453 = sbr.rel (%p450_p9) target bundleno = 4889 (0x1319), region = 80  ;;  %s3972_s0 = sld [smem:[#allocation8_spill]] (!%p450_p9) }
  0x15   : > { %s3973_s2 = sld [smem:[#allocation10_spill]] (!%p450_p9)  ;;  %s2884_s20 = sshll.u32 (!%p450_p9), %s3473_s22, 7 }
  0x19   : > { %s502_s30 = scalar_select %p501_p10, %s3473_s22, 1  ;;  %vm513_vm0 = vcmask 261120   ;;  %v3369_v21 = vmov 0.0   ;;  %v585_v22 = vld [vmem:[%s3948_s4 + $0x18] sm:$0xff]  ;;  %v584_v24 = vld [vmem:[%s3948_s4 + $0x10] sm:$0xff]  ;;  %v583_v26 = vld [vmem:[%s3948_s4 + $0x8] sm:$0xff] }
  0x1a   : > { %3002 = vmatprep.subr.mxu0 %v3369_v21  ;;  %v663_v23 = vld [vmem:[%s3949_s5 + $0x18] sm:$0xff]  ;;  %v662_v25 = vld [vmem:[%s3949_s5 + $0x10] sm:$0xff]  ;;  %v661_v27 = vld [vmem:[%s3949_s5 + $0x8] sm:$0xff]  ;;  %vm3370_vm1 = vmmov 0   ;;  %vm824_vm2 = vcmask 64512   ;;  %vm904_vm3 = vcmask 130048  }
  0x1b   : > { %s2887_s16 = sshll.u32 %s502_s30, 4  ;;  %s2792_s17 = sshll.u32 %s502_s30, 3  ;;  %3003 = vmatpush3.msra.mxu0 %v585_v22  ;;  %3013 = vmatprep.subr.mxu1 %v663_v23  ;;  %v582_v28 = vld [vmem:[%s3948_s4] sm:$0xff]  ;;  %v748_v30 = vld [vmem:[%s3950_s6 + $0x18] sm:$0xff]  ;;  %v747_v54 = vld [vmem:[%s3950_s6 + $0x10] sm:$0xff]  ;;  %vm2626_vm4 = vcmask 523264  }
  0x1c   : > { %s509_s26 = scalar_lea.vmem %s3971_s1, %s2887_s16  ;;  %s504_s24 = scalar_lea.vmem %s3972_s0, %s2792_s17  ;;  %3004 = vmatprep.subr.mxu0 %v3369_v21  ;;  %3014 = vmatpush3.msra.mxu1 %v663_v23  ;;  %v660_v29 = vld [vmem:[%s3949_s5] sm:$0xff]  ;;  %v746_v55 = vld [vmem:[%s3950_s6 + $0x8] sm:$0xff]  ;;  %v2816_v60 = vld [vmem:[%s3949_s5 + $0x38] sm:$0xff] }
  0x1d   : > { %v511_v0 = vld [vmem:[%s509_s26] sm:$0xff]  ;;  %v512_v1 = vld [vmem:[%s509_s26 + $0x8] sm:$0xff]  ;;  %3005 = vmatpush3.msra.mxu0 %v584_v24  ;;  %3015 = vmatprep.subr.mxu1 %v662_v25  ;;  %v2815_v63 = vld [vmem:[%s3949_s5 + $0x30] sm:$0xff]  ;;  %s498_s17 = sand.u32 1, %s3359_s19   ;;  %s2714_s0 = scalar_lea.hbm %s3959_s15, %s2884_s20 }
  0x1e   : > { %v3508_v2 = vld [vmem:[%s504_s24] sm:$0xff]  ;;  %v544_v3 = vsel %vm513_vm0, %v511_v0, 0.0  ;;  %v547_v5 = vsel %vm513_vm0, %v512_v1, 0.0  ;;  %3006 = vmatprep.subr.mxu0 %v3369_v21  ;;  %3016 = vmatpush3.msra.mxu1 %v662_v25  ;;  %v2810_v22 = vld [vmem:[%s3948_s4 + $0x30] sm:$0xff]  ;;  %v2809_v24 = vld [vmem:[%s3948_s4 + $0x28] sm:$0xff]  ;;  %s2791_s23 = sshll.u32 %s498_s17, 3 }
  0x1f   : > { %v514_v4 = vsel %vm513_vm0, %v3508_v2, 0.0  ;;  %545 = vadd.xlane.f32.xlu0 %v544_v3  ;;  %3007 = vmatpush3.msra.mxu0 %v583_v26  ;;  %v2795_v41 = vld [vmem:[%s3973_s2] ss:$0 sm:$0xff]  ;;  %v2822_v26 = vld [vmem:[%s3950_s6 + $0x38] sm:$0xff]  ;;  %s500_s24 = scalar_lea.vmem [#allocation2], %s2791_s23  ;;  %s2703_s1 = scalar_lea.sflag [#allocation3], %s498_s17 }
  0x20   : > { %515 = vadd.xlane.f32.xlu1 %v514_v4  ;;  %3017 = vmatprep.subr.mxu1 %v661_v27  ;;  %v2796_v43 = vld [vmem:[%s3947_s3] ss:$0 sm:$0xff]  ;;  %s2716_s27 = sshll.u32 %s500_s24, 4  ;;  %s3371_s22 = smov [#allocation2]   ;;  %s2717_s27 = int_to_ptr.vmem [resolvable:$true] %s2716_s27 }
  0x21   : > { %3008 = vmatprep.subr.mxu0 %v3369_v21  ;;  %3018 = vmatpush3.msra.mxu1 %v661_v27  ;;  %v745_v56 = vld [vmem:[%s3950_s6] sm:$0xff]  ;;  %v2821_v27 = vld [vmem:[%s3950_s6 + $0x30] sm:$0xff]  ;;  %s3307_s2 = scalar_lea.vmem %s2717_s27, 128  ;;  %s3311_s23 = sshll.u32 %s3371_s22, 4  ;;  %s3312_s23 = int_to_ptr.vmem [resolvable:$false] %s3311_s23 }
  0x22   : > { %3009 = vmatpush3.msra.mxu0 %v582_v28  ;;  %3019 = vmatprep.subr.mxu1 %v660_v29  ;;  %v2813_v4 = vld [vmem:[%s3949_s5 + $0x20] sm:$0xff]  ;;  %v2820_v28 = vld [vmem:[%s3950_s6 + $0x28] sm:$0xff]  ;;  %p3308_p11 = scmp.ne.s32.totalorder %s2717_s27, %s3307_s2  ;;  %s3313_s25 = scalar_lea.vmem %s3312_s23, 256 }
  0x23   : > { %548 = vadd.xlane.f32.xlu0 %v547_v5  ;;  %3010 = vmatprep.mubr.msk.f32.mxu0 %vm3370_vm1, %v3369_v21  ;;  %v2808_v25 = vld [vmem:[%s3948_s4 + $0x20] sm:$0xff]  ;;  %p3314_p0 = scmp.lt.s32.totalorder %s2717_s27, %s3312_s23  ;;  %p3315_p1 = scmp.lt.s32.totalorder %s3313_s25, %s3307_s2 }
  0x24   : > { %3020 = vmatpush3.msra.mxu1 %v660_v29  ;;  %3024 = vmatprep.subr.mxu0 %v748_v30  ;;  %v2819_v29 = vld [vmem:[%s3950_s6 + $0x20] sm:$0xff]  ;;  %p3309_p12 = pnand %p3308_p11, %p3490_p5 }
  0x25   : > { %3035 = vmatprep.subr.mxu1 %v3369_v21  ;;  %p3316_p2 = por %p3315_p1, %p3314_p0 }
  0x26   : > { %p3310_p13 = pneg %p3309_p12 }
  0x28   : > { %p3317_p3 = pnand %p3316_p2, %p3310_p13 }
  0xa8   : > { %v546_v6 = vpop.xlane.xlu0 %545 }
  0xa9   : > { %v516_v7 = vpop.xlane.xlu1 %515  ;;  %v550_v8 = vmul.f32 0.03125, %v546_v6 }
  0xaa   : > { %v518_v9 = vmul.f32 0.03125, %v516_v7 }
  0xab   : > { %v552_v10 = vsub.f32 %v511_v0, %v550_v8 }
  0xac   : > { %v3515_v11 = vsub.f32 %v3508_v2, %v518_v9  ;;  %v549_v12 = vpop.xlane.xlu0 %548 }
  0xad   : > { %v551_v13 = vmul.f32 0.03125, %v549_v12  ;;  %v554_v14 = vmul.f32 %v552_v10, %v552_v10 }
  0xae   : > { %v520_v15 = vmul.f32 %v3515_v11, %v3515_v11 }
  0xaf   : > { %v553_v16 = vsub.f32 %v512_v1, %v551_v13  ;;  %v556_v17 = vsel %vm513_vm0, %v554_v14, 0.0  ;;  %v2814_v1 = vld [vmem:[%s3949_s5 + $0x28] sm:$0xff] }
  0xb0   : > { %557 = vadd.xlane.f32.xlu1 %v556_v17  ;;  %v521_v19 = vsel %vm513_vm0, %v520_v15, 0.0 }
  0xb1   : > { %v555_v18 = vmul.f32 %v553_v16, %v553_v16 }
  0xb3   : > { %v559_v20 = vsel %vm513_vm0, %v555_v18, 0.0  ;;  %v989_v18 = vld [vmem:[%s3951_s7] sm:$0xff] }
  0xb4   : > { %560 = vadd.xlane.f32.xlu0 %v559_v20  ;;  %522 = vadd.xlane.f32.xlu1 %v521_v19  ;;  %v2811_v19 = vld [vmem:[%s3948_s4 + $0x38] sm:$0xff] }
 0x139   : > { %v558_v31 = vpop.xlane.xlu1 %557 }
 0x13a   : > { %v562_v32 = vmul.f32 0.03125, %v558_v31 }
 0x13c   : > { %v564_v33 = vadd.f32 1e-05, %v562_v32 }
 0x13d   : > { %v561_v34 = vpop.xlane.xlu0 %560  ;;  %v523_v35 = vpop.xlane.xlu1 %522 }
 0x13e   : > { %3281 = vrsqrt.f32 %v564_v33  ;;  %v563_v36 = vmul.f32 0.03125, %v561_v34  ;;  %v524_v37 = vmul.f32 0.03125, %v523_v35 }
 0x140   : > { %v565_v38 = vadd.f32 1e-05, %v563_v36  ;;  %v525_v39 = vadd.f32 1e-05, %v524_v37 }
 0x142   : > { %3283 = vrsqrt.f32 %v565_v38 }
 0x143   : > { %3285 = vrsqrt.f32 %v525_v39 }
 0x14b   : > { %v3282_v40 = vpop.eup %3281 }
 0x14c   : > { %v568_v42 = vmul.f32 %v3282_v40, %v552_v10 }
 0x14e   : > { %v570_v44 = vmul.f32 %v2795_v41, %v568_v42 }
 0x14f   : > { %v3284_v45 = vpop.eup %3283 }
 0x150   : > { %v3286_v46 = vpop.eup %3285  ;;  %v3562_v47 = vadd.f32 %v2796_v43, %v570_v44  ;;  %v569_v48 = vmul.f32 %v3284_v45, %v553_v16  ;;  %v2829_v45 = vld [vmem:[%s3951_s7 + $0x8] sm:$0xff] }
 0x151   : > { %v527_v49 = vmul.f32 %v3286_v46, %v3515_v11 }
 0x152   : > { %v571_v50 = vmul.f32 %v2795_v41, %v569_v48  ;;  %3021 = vmatprep.mubr.msk.f32.mxu1 %vm513_vm0, %v3562_v47 }
 0x153   : > { %v535_v51 = vmul.f32 %v2795_v41, %v527_v49 }
 0x154   : > { %v3567_v52 = vadd.f32 %v2796_v43, %v571_v50  ;;  %v2834_v50 = vld [vmem:[%s3948_s4 + $0x58] sm:$0xff] }
 0x155   : > { %v3569_v53 = vadd.f32 %v2796_v43, %v535_v51  ;;  %v2833_v51 = vld [vmem:[%s3948_s4 + $0x50] sm:$0xff] }
 0x156   : > { %3022 = vmatmul.mubr.msk.f32.vlgmr.msra.gmra.mxu1 %vm513_vm0, %v3567_v52 }
 0x157   : > { %3011 = vmatmul.mubr.msk.f32.vlgmr.msra.gmra.mxu0 %vm513_vm0, %v3569_v53  ;;  %3039 = vmatprep.mubr.msk.f32.mxu1 %vm3370_vm1, %v3369_v21 }
 0x158   : > { %3025 = vmatpush3.msra.mxu0 %v748_v30  ;;  %3032 = vmatprep.mubr.msk.f32.mxu0 %vm513_vm0, %v3562_v47 }
 0x159   : > { %3026 = vmatprep.subr.mxu0 %v747_v54 }
 0x15a   : > { %3027 = vmatpush3.msra.mxu0 %v747_v54  ;;  %v2832_v54 = vld [vmem:[%s3948_s4 + $0x48] sm:$0xff] }
 0x15b   : > { %3028 = vmatprep.subr.mxu0 %v746_v55 }
 0x15c   : > { %3029 = vmatpush3.msra.mxu0 %v746_v55  ;;  %v2831_v55 = vld [vmem:[%s3948_s4 + $0x40] sm:$0xff] }
 0x15d   : > { %3030 = vmatprep.subr.mxu0 %v745_v56 }
 0x15e   : > { %3031 = vmatpush3.msra.mxu0 %v745_v56  ;;  %v2845_v56 = vld [vmem:[%s3950_s6 + $0x58] sm:$0xff] }
 0x15f   : > { %3033 = vmatmul.mubr.msk.f32.vlgmr.msra.gmra.mxu0 %vm513_vm0, %v3567_v52  ;;  %3042 = vmatprep.subr.mxu0 %v3369_v21 }
 0x160   : > { %3046 = vmatprep.mubr.msk.f32.mxu0 %vm3370_vm1, %v3369_v21 }
 0x216   : > { %v3023_v57 = vpop.f32.mrf.mxu1 }
 0x217   : > { %v655_v58 = vpop.f32.mrf.mxu0  ;;  %3036 = vmatpush3.xpose.msk.msra.mxu1 %vm824_vm2, %v3023_v57  ;;  %v2844_v57 = vld [vmem:[%s3950_s6 + $0x50] sm:$0xff] }
 0x218   : > { %3037 = vmatprep.subr.mxu1 %v3369_v21  ;;  %v736_v61 = vpop.f32.mrf.mxu1  ;;  %v659_v62 = vmul.f32 0.17677669, %v655_v58  ;;  %v2843_v58 = vld [vmem:[%s3950_s6 + $0x48] sm:$0xff] }
 0x219   : > { %v3012_v59 = vpop.f32.mrf.mxu0 }
 0x21a   : > { %v2842_v59 = vld [vmem:[%s3950_s6 + $0x40] sm:$0xff] }
 0x21b   : > { %3038 = vmatpush3.xpose.msk.msra.mxu1 %vm824_vm2, %v736_v61 }
 0x21c   : > { %3065 = vmatprep.subr.mxu1 %v2816_v60 }
 0x21e   : > { %3040 = vmatmul.mubr.msk.f32.vlgmr.msra.gmra.mxu1 %vm824_vm2, %v659_v62  ;;  %v2838_v62 = vld [vmem:[%s3949_s5 + $0x50] sm:$0xff] }
 0x21f   : > { %v3034_v0 = vpop.f32.mrf.mxu0  ;;  %3066 = vmatpush3.msra.mxu1 %v2816_v60  ;;  %3073 = vmatprep.mubr.msk.f32.mxu1 %vm513_vm0, %v3562_v47  ;;  %v2839_v60 = vld [vmem:[%s3949_s5 + $0x58] sm:$0xff] }
 0x220   : > { %3043 = vmatpush3.msra.mxu0 %v3034_v0  ;;  %3067 = vmatprep.subr.mxu1 %v2815_v63  ;;  %v2837_v0 = vld [vmem:[%s3949_s5 + $0x48] sm:$0xff] }
 0x221   : > { %v815_v3 = vpop.f32.mrf.mxu0  ;;  %3044 = vmatprep.subr.mxu0 %v3369_v21  ;;  %3068 = vmatpush3.msra.mxu1 %v2815_v63 }
 0x222   : > { %3045 = vmatpush3.msra.mxu0 %v815_v3  ;;  %3069 = vmatprep.subr.mxu1 %v2814_v1 }
 0x223   : > { %3070 = vmatpush3.msra.mxu1 %v2814_v1  ;;  %3049 = vmatprep.subr.mxu0 %v3369_v21  ;;  %v2836_v1 = vld [vmem:[%s3949_s5 + $0x40] sm:$0xff] }
 0x224   : > { %3071 = vmatprep.subr.mxu1 %v2813_v4 }
 0x225   : > { %3072 = vmatpush3.msra.mxu1 %v2813_v4 }
 0x226   : > { %3074 = vmatmul.mubr.msk.f32.vlgmr.msra.gmra.mxu1 %vm513_vm0, %v3567_v52  ;;  %3087 = vmatprep.subr.mxu1 %v3369_v21 }
 0x227   : > { %3091 = vmatprep.mubr.msk.f32.mxu1 %vm3370_vm1, %v3369_v21 }
 0x2de   : > { %v900_v5 = vpop.f32.mrf.mxu1 }
 0x2df   : > { %v905_v6 = vsel %vm904_vm3, %v900_v5, -inf }
 0x2e0   : > { %906 = vmax.xlane.f32.xlu0 %v905_v6  ;;  %v3041_v7 = vpop.f32.mrf.mxu1 }
 0x2e1   : > { %v2797_v7 = vld [vmem:[%s3952_s8] ss:$0 sm:$0xff] }
 0x2e6   : > { %v3075_v8 = vpop.f32.mrf.mxu1 }
 0x2e7   : > { %3088 = vmatpush3.xpose.msk.msra.mxu1 %vm824_vm2, %v3075_v8  ;;  %v581_v8 = vadd.f32 %v2797_v7, %v3508_v2 }
 0x2e8   : > { %3089 = vmatprep.subr.mxu1 %v3369_v21  ;;  %v1211_v9 = vpop.f32.mrf.mxu1 }
 0x2eb   : > { %3090 = vmatpush3.xpose.msk.msra.mxu1 %vm824_vm2, %v1211_v9 }
 0x2ec   : > { %3101 = vmatprep.subr.mxu1 %v3369_v21 }
 0x369   : > { %v907_v10 = vpop.xlane.xlu0 %906 }
 0x36a   : > { %v908_v11 = vsub.f32 %v900_v5, %v907_v10 }
 0x36c   : > { %v909_v12 = vmul.f32 1.442695, %v908_v11 }
 0x36e   : > { %3287 = vpow2.f32 %v909_v12 }
 0x37b   : > { %v3288_v13 = vpop.eup %3287 }
 0x37c   : > { %v911_v14 = vsel %vm904_vm3, %v3288_v13, 0.0 }
 0x37d   : > { %912 = vadd.xlane.f32.xlu1 %v911_v14 }
 0x406   : > { %v913_v15 = vpop.xlane.xlu1 %912 }
 0x407   : > { %3289 = vrcp.f32 %v913_v15 }
 0x414   : > { %v3290_v16 = vpop.eup %3289 }
 0x415   : > { %v915_v17 = vmul.f32 %v3290_v16, %v3288_v13 }
 0x417   : > { %3047 = vmatmul.mubr.msk.f32.vlgmr.msra.gmra.mxu0 %vm904_vm3, %v915_v17 }
 0x418   : > { %3050 = vmatpush3.msra.mxu0 %v989_v18  ;;  %3051 = vmatprep.mubr.msk.f32.mxu0 %vm3370_vm1, %v3369_v21 }
 0x419   : > { %3054 = vmatprep.subr.mxu0 %v3369_v21 }
 0x4d7   : > { %v985_v20 = vpop.f32.mrf.mxu0 }
 0x4d8   : > { %3052 = vmatmul.mubr.msk.f32.vlgmr.msra.gmra.mxu0 %vm824_vm2, %v985_v20 }
 0x4d9   : > { %3055 = vmatpush3.msra.mxu0 %v2811_v19  ;;  %v3048_v23 = vpop.f32.mrf.mxu0  ;;  %3062 = vmatprep.mubr.msk.f32.mxu0 %vm3370_vm1, %v3369_v21 }
 0x4da   : > { %3056 = vmatprep.subr.mxu0 %v3369_v21 }
 0x4db   : > { %3057 = vmatpush3.msra.mxu0 %v2810_v22 }
 0x4dc   : > { %3058 = vmatprep.subr.mxu0 %v3369_v21 }
 0x4dd   : > { %3059 = vmatpush3.msra.mxu0 %v2809_v24  ;;  %v2852_v24 = vld [vmem:[%s3951_s7 + $0x10] sm:$0xff] }
 0x4de   : > { %3060 = vmatprep.subr.mxu0 %v3369_v21 }
 0x4df   : > { %3061 = vmatpush3.msra.mxu0 %v2808_v25 }
 0x4e0   : > { %3063 = vmatmul.mubr.msk.f32.vlgmr.msra.gmra.mxu0 %vm513_vm0, %v3569_v53  ;;  %3076 = vmatprep.subr.mxu0 %v2822_v26 }
 0x4e1   : > { %3077 = vmatpush3.msra.mxu0 %v2822_v26  ;;  %3084 = vmatprep.mubr.msk.f32.mxu0 %vm513_vm0, %v3562_v47 }
 0x4e2   : > { %3078 = vmatprep.subr.mxu0 %v2821_v27 }
 0x4e3   : > { %3079 = vmatpush3.msra.mxu0 %v2821_v27 }
 0x4e4   : > { %3080 = vmatprep.subr.mxu0 %v2820_v28 }
 0x4e5   : > { %3081 = vmatpush3.msra.mxu0 %v2820_v28  ;;  %v2857_v28 = vld [vmem:[%s3948_s4 + $0x78] sm:$0xff] }
 0x4e6   : > { %3082 = vmatprep.subr.mxu0 %v2819_v29 }
 0x4e7   : > { %3083 = vmatpush3.msra.mxu0 %v2819_v29  ;;  %v2856_v29 = vld [vmem:[%s3948_s4 + $0x70] sm:$0xff] }
 0x4e8   : > { %3085 = vmatmul.mubr.msk.f32.vlgmr.msra.gmra.mxu0 %vm513_vm0, %v3567_v52  ;;  %3094 = vmatprep.subr.mxu0 %v3369_v21 }
 0x4e9   : > { %3098 = vmatprep.mubr.msk.f32.mxu0 %vm3370_vm1, %v3369_v21 }
 0x598   : > { %v3670_v30 = vpop.f32.mrf.mxu0 }
 0x599   : > { %v1063_v9 = vadd.f32 %v3670_v30, %v581_v8  ;;  %v2855_v30 = vld [vmem:[%s3948_s4 + $0x68] sm:$0xff] }
 0x59a   : > { %v3053_v31 = vpop.f32.mrf.mxu0 }
 0x59b   : > { %v2854_v31 = vld [vmem:[%s3948_s4 + $0x60] sm:$0xff] }
 0x5a0   : > { %v1135_v32 = vpop.f32.mrf.mxu0 }
 0x5a1   : > { %v1139_v33 = vmul.f32 0.17677669, %v1135_v32  ;;  %v2868_v32 = vld [vmem:[%s3950_s6 + $0x78] sm:$0xff] }
 0x5a2   : > { %v3064_v34 = vpop.f32.mrf.mxu0 }
 0x5a3   : > { %3092 = vmatmul.mubr.msk.f32.vlgmr.msra.gmra.mxu1 %vm824_vm2, %v1139_v33  ;;  %v2867_v33 = vld [vmem:[%s3950_s6 + $0x70] sm:$0xff]  ;;  %v2866_v34 = vld [vmem:[%s3950_s6 + $0x68] sm:$0xff] }
 0x5a4   : > { %3103 = vmatprep.mubr.msk.f32.mxu1 %vm3370_vm1, %v3369_v21  ;;  %3102 = vmatpush3.msra.mxu1 %v2829_v45 }
 0x5a5   : > { %3117 = vmatprep.subr.mxu1 %v2839_v60 }
 0x5a8   : > { %v3086_v35 = vpop.f32.mrf.mxu0 }
 0x5a9   : > { %3095 = vmatpush3.msra.mxu0 %v3086_v35  ;;  %v2865_v35 = vld [vmem:[%s3950_s6 + $0x60] sm:$0xff] }
 0x5aa   : > { %v1291_v36 = vpop.f32.mrf.mxu0  ;;  %3096 = vmatprep.subr.mxu0 %v3369_v21 }
 0x5ab   : > { %3097 = vmatpush3.msra.mxu0 %v1291_v36 }
 0x5ac   : > { %3106 = vmatprep.subr.mxu0 %v3369_v21 }
 0x663   : > { %v1375_v37 = vpop.f32.mrf.mxu1 }
 0x664   : > { %v1379_v38 = vsel %vm904_vm3, %v1375_v37, -inf }
 0x665   : > { %1380 = vmax.xlane.f32.xlu0 %v1379_v38  ;;  %v3093_v39 = vpop.f32.mrf.mxu1 }
 0x666   : > { %v2860_v39 = vld [vmem:[%s3949_s5 + $0x68] sm:$0xff] }
 0x6ee   : > { %v1381_v40 = vpop.xlane.xlu0 %1380 }
 0x6ef   : > { %v1382_v41 = vsub.f32 %v1375_v37, %v1381_v40  ;;  %v2861_v37 = vld [vmem:[%s3949_s5 + $0x70] sm:$0xff]  ;;  %v2859_v40 = vld [vmem:[%s3949_s5 + $0x60] sm:$0xff] }
 0x6f1   : > { %v1383_v42 = vmul.f32 1.442695, %v1382_v41 }
 0x6f3   : > { %3291 = vpow2.f32 %v1383_v42 }
 0x700   : > { %v3292_v43 = vpop.eup %3291 }
 0x701   : > { %v1385_v44 = vsel %vm904_vm3, %v3292_v43, 0.0 }
 0x702   : > { %1386 = vadd.xlane.f32.xlu1 %v1385_v44 }
 0x78b   : > { %v1387_v46 = vpop.xlane.xlu1 %1386 }
 0x78c   : > { %3293 = vrcp.f32 %v1387_v46 }
 0x799   : > { %v3294_v48 = vpop.eup %3293 }
 0x79a   : > { %v1389_v49 = vmul.f32 %v3294_v48, %v3292_v43 }
 0x79c   : > { %3099 = vmatmul.mubr.msk.f32.vlgmr.msra.gmra.mxu0 %vm904_vm3, %v1389_v49 }
 0x79d   : > { %3107 = vmatpush3.msra.mxu0 %v2834_v50  ;;  %3114 = vmatprep.mubr.msk.f32.mxu0 %vm3370_vm1, %v3369_v21 }
 0x79e   : > { %3108 = vmatprep.subr.mxu0 %v3369_v21 }
 0x79f   : > { %3109 = vmatpush3.msra.mxu0 %v2833_v51 }
 0x7a0   : > { %3110 = vmatprep.subr.mxu0 %v3369_v21 }
 0x7a1   : > { %3111 = vmatpush3.msra.mxu0 %v2832_v54 }
 0x7a2   : > { %3112 = vmatprep.subr.mxu0 %v3369_v21 }
 0x7a3   : > { %3113 = vmatpush3.msra.mxu0 %v2831_v55 }
 0x7a4   : > { %3115 = vmatmul.mubr.msk.f32.vlgmr.msra.gmra.mxu0 %vm513_vm0, %v3569_v53  ;;  %3128 = vmatprep.subr.mxu0 %v2845_v56 }
 0x7a5   : > { %3129 = vmatpush3.msra.mxu0 %v2845_v56  ;;  %3136 = vmatprep.mubr.msk.f32.mxu0 %vm513_vm0, %v3562_v47 }
 0x7a6   : > { %3130 = vmatprep.subr.mxu0 %v2844_v57 }
 0x7a7   : > { %3131 = vmatpush3.msra.mxu0 %v2844_v57 }
 0x7a8   : > { %3132 = vmatprep.subr.mxu0 %v2843_v58 }
 0x7a9   : > { %3133 = vmatpush3.msra.mxu0 %v2843_v58 }
 0x7aa   : > { %3134 = vmatprep.subr.mxu0 %v2842_v59 }
 0x7ab   : > { %3135 = vmatpush3.msra.mxu0 %v2842_v59 }
 0x7ac   : > { %3137 = vmatmul.mubr.msk.f32.vlgmr.msra.gmra.mxu0 %vm513_vm0, %v3567_v52  ;;  %3146 = vmatprep.subr.mxu0 %v3369_v21 }
 0x7ad   : > { %3150 = vmatprep.mubr.msk.f32.mxu0 %vm3370_vm1, %v3369_v21 }
 0x85c   : > { %v1459_v61 = vpop.f32.mrf.mxu0 }
 0x85d   : > { %3104 = vmatmul.mubr.msk.f32.vlgmr.msra.gmra.mxu1 %vm824_vm2, %v1459_v61 }
 0x85e   : > { %3118 = vmatpush3.msra.mxu1 %v2839_v60  ;;  %v3100_v63 = vpop.f32.mrf.mxu0  ;;  %3125 = vmatprep.mubr.msk.f32.mxu1 %vm513_vm0, %v3562_v47  ;;  %v2875_v60 = vld [vmem:[%s3951_s7 + $0x18] sm:$0xff] }
 0x85f   : > { %3119 = vmatprep.subr.mxu1 %v2838_v62 }
 0x860   : > { %3120 = vmatpush3.msra.mxu1 %v2838_v62 }
 0x861   : > { %3121 = vmatprep.subr.mxu1 %v2837_v0 }
 0x862   : > { %3122 = vmatpush3.msra.mxu1 %v2837_v0 }
 0x863   : > { %3123 = vmatprep.subr.mxu1 %v2836_v1 }
 0x864   : > { %v1610_v3 = vpop.f32.mrf.mxu0  ;;  %3124 = vmatpush3.msra.mxu1 %v2836_v1 }
 0x865   : > { %3126 = vmatmul.mubr.msk.f32.vlgmr.msra.gmra.mxu1 %vm513_vm0, %v3567_v52  ;;  %3139 = vmatprep.subr.mxu1 %v3369_v21  ;;  %v1614_v15 = vmul.f32 0.17677669, %v1610_v3 }
 0x866   : > { %v3116_v4 = vpop.f32.mrf.mxu0  ;;  %3143 = vmatprep.mubr.msk.f32.mxu1 %vm3370_vm1, %v3369_v21 }
 0x86c   : > { %v3138_v5 = vpop.f32.mrf.mxu0 }
 0x86d   : > { %3147 = vmatpush3.msra.mxu0 %v3138_v5 }
 0x86e   : > { %v1766_v6 = vpop.f32.mrf.mxu0  ;;  %3148 = vmatprep.subr.mxu0 %v3369_v21 }
 0x86f   : > { %3149 = vmatpush3.msra.mxu0 %v1766_v6 }
 0x870   : > { %3158 = vmatprep.subr.mxu0 %v3369_v21 }
 0x91d   : > { %v1534_v10 = vpop.f32.mrf.mxu1 }
 0x91e   : > { %v3748_v11 = vadd.f32 %v1534_v10, %v1063_v9 }
 0x91f   : > { %v3105_v12 = vpop.f32.mrf.mxu1 }
 0x920   : > { %v2521_v12 = vld [vmem:[%s3955_s11 + $0x18] sm:$0xff] }
 0x925   : > { %v3127_v13 = vpop.f32.mrf.mxu1 }
 0x926   : > { %3140 = vmatpush3.xpose.msk.msra.mxu1 %vm824_vm2, %v3127_v13  ;;  %v2520_v13 = vld [vmem:[%s3955_s11 + $0x10] sm:$0xff] }
 0x927   : > { %3141 = vmatprep.subr.mxu1 %v3369_v21  ;;  %v1686_v14 = vpop.f32.mrf.mxu1 }
 0x92a   : > { %3142 = vmatpush3.xpose.msk.msra.mxu1 %vm824_vm2, %v1686_v14  ;;  %v2519_v14 = vld [vmem:[%s3955_s11 + $0x8] sm:$0xff] }
 0x92b   : > { %3153 = vmatprep.subr.mxu1 %v3369_v21 }
 0x92d   : > { %3144 = vmatmul.mubr.msk.f32.vlgmr.msra.gmra.mxu1 %vm824_vm2, %v1614_v15  ;;  %v2518_v15 = vld [vmem:[%s3955_s11] sm:$0xff] }
 0x92e   : > { %3155 = vmatprep.mubr.msk.f32.mxu1 %vm3370_vm1, %v3369_v21  ;;  %3154 = vmatpush3.msra.mxu1 %v2852_v24 }
 0x9ed   : > { %v1850_v2 = vpop.f32.mrf.mxu1 }
 0x9ee   : > { %v1854_v16 = vsel %vm904_vm3, %v1850_v2, -inf }
 0x9ef   : > { %1855 = vmax.xlane.f32.xlu0 %v1854_v16  ;;  %v3145_v17 = vpop.f32.mrf.mxu1 }
 0xa78   : > { %v1856_v18 = vpop.xlane.xlu0 %1855 }
 0xa79   : > { %v1857_v19 = vsub.f32 %v1850_v2, %v1856_v18 }
 0xa7b   : > { %v1858_v20 = vmul.f32 1.442695, %v1857_v19  ;;  %v2877_v19 = vld [vmem:[%s3953_s9] ss:$0 sm:$0xff] }
 0xa7d   : > { %3295 = vpow2.f32 %v1858_v20 }
 0xa8a   : > { %v3296_v22 = vpop.eup %3295 }
 0xa8b   : > { %v1860_v23 = vsel %vm904_vm3, %v3296_v22, 0.0 }
 0xa8c   : > { %1861 = vadd.xlane.f32.xlu1 %v1860_v23 }
 0xb15   : > { %v1862_v25 = vpop.xlane.xlu1 %1861 }
 0xb16   : > { %3297 = vrcp.f32 %v1862_v25  ;;  %v2618_v25 = vld [vmem:[%s3957_s13 + $0x38] sm:$0xff] }
 0xb23   : > { %v3298_v26 = vpop.eup %3297 }
 0xb24   : > { %v1864_v27 = vmul.f32 %v3298_v26, %v3296_v22  ;;  %v2878_v22 = vld [vmem:[%s3954_s10] ss:$0 sm:$0xff]  ;;  %v2617_v26 = vld [vmem:[%s3957_s13 + $0x30] sm:$0xff] }
 0xb26   : > { %3151 = vmatmul.mubr.msk.f32.vlgmr.msra.gmra.mxu0 %vm904_vm3, %v1864_v27  ;;  %v2616_v27 = vld [vmem:[%s3957_s13 + $0x28] sm:$0xff] }
 0xb27   : > { %3159 = vmatpush3.msra.mxu0 %v2857_v28  ;;  %3166 = vmatprep.mubr.msk.f32.mxu0 %vm3370_vm1, %v3369_v21  ;;  %v2615_v28 = vld [vmem:[%s3957_s13 + $0x20] sm:$0xff] }
 0xb28   : > { %3160 = vmatprep.subr.mxu0 %v3369_v21 }
 0xb29   : > { %3161 = vmatpush3.msra.mxu0 %v2856_v29  ;;  %v2614_v29 = vld [vmem:[%s3957_s13 + $0x18] sm:$0xff] }
 0xb2a   : > { %3162 = vmatprep.subr.mxu0 %v3369_v21 }
 0xb2b   : > { %3163 = vmatpush3.msra.mxu0 %v2855_v30  ;;  %v2613_v30 = vld [vmem:[%s3957_s13 + $0x10] sm:$0xff] }
 0xb2c   : > { %3164 = vmatprep.subr.mxu0 %v3369_v21 }
 0xb2d   : > { %3165 = vmatpush3.msra.mxu0 %v2854_v31  ;;  %v2612_v31 = vld [vmem:[%s3957_s13 + $0x8] sm:$0xff] }
 0xb2e   : > { %3167 = vmatmul.mubr.msk.f32.vlgmr.msra.gmra.mxu0 %vm513_vm0, %v3569_v53  ;;  %3180 = vmatprep.subr.mxu0 %v2868_v32  ;;  %v2862_v53 = vld [vmem:[%s3949_s5 + $0x78] sm:$0xff] }
 0xb2f   : > { %3181 = vmatpush3.msra.mxu0 %v2868_v32  ;;  %3188 = vmatprep.mubr.msk.f32.mxu0 %vm513_vm0, %v3562_v47  ;;  %v2611_v32 = vld [vmem:[%s3957_s13] sm:$0xff] }
 0xb30   : > { %3182 = vmatprep.subr.mxu0 %v2867_v33  ;;  %3169 = vmatprep.subr.mxu1 %v2862_v53 }
 0xb31   : > { %3183 = vmatpush3.msra.mxu0 %v2867_v33  ;;  %v2879_v33 = vld [vmem:[%s3956_s12] ss:$0 sm:$0xff] }
 0xb32   : > { %3184 = vmatprep.subr.mxu0 %v2866_v34 }
 0xb33   : > { %3185 = vmatpush3.msra.mxu0 %v2866_v34 }
 0xb34   : > { %3186 = vmatprep.subr.mxu0 %v2865_v35 }
 0xb35   : > { %3187 = vmatpush3.msra.mxu0 %v2865_v35 }
 0xb36   : > { %3189 = vmatmul.mubr.msk.f32.vlgmr.msra.gmra.mxu0 %vm513_vm0, %v3567_v52  ;;  %3198 = vmatprep.subr.mxu0 %v3369_v21 }
 0xb37   : > { %3202 = vmatprep.mubr.msk.f32.mxu0 %vm3370_vm1, %v3369_v21 }
 0xbe6   : > { %v1934_v36 = vpop.f32.mrf.mxu0 }
 0xbe7   : > { %3156 = vmatmul.mubr.msk.f32.vlgmr.msra.gmra.mxu1 %vm824_vm2, %v1934_v36 }
 0xbe8   : > { %3170 = vmatpush3.msra.mxu1 %v2862_v53  ;;  %v3152_v38 = vpop.f32.mrf.mxu0  ;;  %3177 = vmatprep.mubr.msk.f32.mxu1 %vm513_vm0, %v3562_v47 }
 0xbe9   : > { %3171 = vmatprep.subr.mxu1 %v2861_v37 }
 0xbea   : > { %3172 = vmatpush3.msra.mxu1 %v2861_v37 }
 0xbeb   : > { %3173 = vmatprep.subr.mxu1 %v2860_v39 }
 0xbec   : > { %3174 = vmatpush3.msra.mxu1 %v2860_v39 }
 0xbed   : > { %3175 = vmatprep.subr.mxu1 %v2859_v40 }
 0xbee   : > { %v2085_v41 = vpop.f32.mrf.mxu0  ;;  %3176 = vmatpush3.msra.mxu1 %v2859_v40 }
 0xbef   : > { %3178 = vmatmul.mubr.msk.f32.vlgmr.msra.gmra.mxu1 %vm513_vm0, %v3567_v52  ;;  %3191 = vmatprep.subr.mxu1 %v3369_v21  ;;  %v2089_v49 = vmul.f32 0.17677669, %v2085_v41 }
 0xbf0   : > { %v3168_v47 = vpop.f32.mrf.mxu0  ;;  %3195 = vmatprep.mubr.msk.f32.mxu1 %vm3370_vm1, %v3369_v21 }
 0xbf6   : > { %v3190_v42 = vpop.f32.mrf.mxu0 }
 0xbf7   : > { %3199 = vmatpush3.msra.mxu0 %v3190_v42 }
 0xbf8   : > { %v2241_v43 = vpop.f32.mrf.mxu0  ;;  %3200 = vmatprep.subr.mxu0 %v3369_v21 }
 0xbf9   : > { %3201 = vmatpush3.msra.mxu0 %v2241_v43  ;;  %v2881_v43 = vld [vmem:[%s3958_s14] ss:$0 sm:$0xff] }
 0xbfa   : > { %3210 = vmatprep.subr.mxu0 %v3369_v21 }
 0xca7   : > { %v2009_v44 = vpop.f32.mrf.mxu1 }
 0xca8   : > { %v2013_v45 = vadd.f32 %v2009_v44, %v3748_v11 }
 0xca9   : > { %v3157_v46 = vpop.f32.mrf.mxu1 }
 0xcaf   : > { %v3179_v48 = vpop.f32.mrf.mxu1 }
 0xcb0   : > { %3192 = vmatpush3.xpose.msk.msra.mxu1 %vm824_vm2, %v3179_v48 }
 0xcb1   : > { %3193 = vmatprep.subr.mxu1 %v3369_v21  ;;  %v2161_v52 = vpop.f32.mrf.mxu1 }
 0xcb4   : > { %3194 = vmatpush3.xpose.msk.msra.mxu1 %vm824_vm2, %v2161_v52 }
 0xcb5   : > { %3205 = vmatprep.subr.mxu1 %v3369_v21 }
 0xcb7   : > { %3196 = vmatmul.mubr.msk.f32.vlgmr.msra.gmra.mxu1 %vm824_vm2, %v2089_v49 }
 0xcb8   : > { %3207 = vmatprep.mubr.msk.f32.mxu1 %vm3370_vm1, %v3369_v21  ;;  %3206 = vmatpush3.msra.mxu1 %v2875_v60 }
 0xcb9   : > { %3221 = vmatprep.subr.mxu1 %v3369_v21 }
 0xd77   : > { %v2325_v50 = vpop.f32.mrf.mxu1 }
 0xd78   : > { %v2329_v51 = vsel %vm904_vm3, %v2325_v50, -inf }
 0xd79   : > { %2330 = vmax.xlane.f32.xlu0 %v2329_v51  ;;  %v3197_v54 = vpop.f32.mrf.mxu1 }
 0xe02   : > { %v2331_v55 = vpop.xlane.xlu0 %2330 }
 0xe03   : > { %v2332_v56 = vsub.f32 %v2325_v50, %v2331_v55 }
 0xe05   : > { %v2333_v57 = vmul.f32 1.442695, %v2332_v56 }
 0xe07   : > { %3299 = vpow2.f32 %v2333_v57 }
 0xe14   : > { %v3300_v58 = vpop.eup %3299 }
 0xe15   : > { %v2335_v59 = vsel %vm904_vm3, %v3300_v58, 0.0 }
 0xe16   : > { %2336 = vadd.xlane.f32.xlu1 %v2335_v59 }
 0xe9f   : > { %v2337_v61 = vpop.xlane.xlu1 %2336 }
 0xea0   : > { %3301 = vrcp.f32 %v2337_v61 }
 0xead   : > { %v3302_v62 = vpop.eup %3301 }
 0xeae   : > { %v2339_v63 = vmul.f32 %v3302_v62, %v3300_v58 }
 0xeb0   : > { %3203 = vmatmul.mubr.msk.f32.vlgmr.msra.gmra.mxu0 %vm904_vm3, %v2339_v63 }
 0xeb1   : > { %3218 = vmatprep.mubr.msk.f32.mxu0 %vm3370_vm1, %v3369_v21  ;;  %3211 = vmatpush3.msra.mxu0 %v2521_v12 }
 0xeb2   : > { %3212 = vmatprep.subr.mxu0 %v3369_v21 }
 0xeb3   : > { %3213 = vmatpush3.msra.mxu0 %v2520_v13 }
 0xeb4   : > { %3214 = vmatprep.subr.mxu0 %v3369_v21 }
 0xeb5   : > { %3215 = vmatpush3.msra.mxu0 %v2519_v14 }
 0xeb6   : > { %3216 = vmatprep.subr.mxu0 %v3369_v21 }
 0xeb7   : > { %3217 = vmatpush3.msra.mxu0 %v2518_v15 }
 0xf70   : > { %v2409_v0 = vpop.f32.mrf.mxu0 }
 0xf71   : > { %3208 = vmatmul.mubr.msk.f32.vlgmr.msra.gmra.mxu1 %vm824_vm2, %v2409_v0 }
 0xf72   : > { %v3204_v1 = vpop.f32.mrf.mxu0  ;;  %3237 = vmatprep.mubr.msk.f32.mxu1 %vm3370_vm1, %v3369_v21  ;;  %3222 = vmatpush3.msra.mxu1 %v2618_v25 }
 0xf73   : > { %3223 = vmatprep.subr.mxu1 %v3369_v21 }
 0xf74   : > { %3224 = vmatpush3.msra.mxu1 %v2617_v26 }
 0xf75   : > { %3225 = vmatprep.subr.mxu1 %v3369_v21 }
 0xf76   : > { %3226 = vmatpush3.msra.mxu1 %v2616_v27 }
 0xf77   : > { %3227 = vmatprep.subr.mxu1 %v3369_v21 }
 0xf78   : > { %3228 = vmatpush3.msra.mxu1 %v2615_v28 }
 0xf79   : > { %3229 = vmatprep.subr.mxu1 %v3369_v21 }
 0xf7a   : > { %3230 = vmatpush3.msra.mxu1 %v2614_v29 }
 0xf7b   : > { %3231 = vmatprep.subr.mxu1 %v3369_v21 }
 0xf7c   : > { %3232 = vmatpush3.msra.mxu1 %v2613_v30 }
 0xf7d   : > { %3233 = vmatprep.subr.mxu1 %v3369_v21 }
 0xf7e   : > { %3234 = vmatpush3.msra.mxu1 %v2612_v31 }
 0xf7f   : > { %3235 = vmatprep.subr.mxu1 %v3369_v21 }
 0xf80   : > { %3236 = vmatpush3.msra.mxu1 %v2611_v32 }
0x1031   : > { %v2484_v3 = vpop.f32.mrf.mxu1 }
0x1032   : > { %v3843_v4 = vadd.f32 %v2484_v3, %v2013_v45 }
0x1033   : > { %v3209_v5 = vpop.f32.mrf.mxu1 }
0x1034   : > { %v2489_v6 = vsel %vm513_vm0, %v3843_v4, 0.0 }
0x1035   : > { %2490 = vadd.xlane.f32.xlu0 %v2489_v6 }
0x10be   : > { %v2491_v7 = vpop.xlane.xlu0 %2490 }
0x10bf   : > { %v2492_v8 = vmul.f32 0.03125, %v2491_v7 }
0x10c1   : > { %v2493_v9 = vsub.f32 %v3843_v4, %v2492_v8 }
0x10c3   : > { %v2494_v10 = vmul.f32 %v2493_v9, %v2493_v9 }
0x10c5   : > { %v2495_v11 = vsel %vm513_vm0, %v2494_v10, 0.0 }
0x10c6   : > { %2496 = vadd.xlane.f32.xlu1 %v2495_v11 }
0x114f   : > { %v2497_v2 = vpop.xlane.xlu1 %2496 }
0x1150   : > { %v2498_v16 = vmul.f32 0.03125, %v2497_v2 }
0x1152   : > { %v2499_v17 = vadd.f32 1e-05, %v2498_v16 }
0x1154   : > { %3303 = vrsqrt.f32 %v2499_v17 }
0x1161   : > { %v3304_v18 = vpop.eup %3303 }
0x1162   : > { %v2501_v20 = vmul.f32 %v3304_v18, %v2493_v9 }
0x1164   : > { %v2509_v23 = vmul.f32 %v2877_v19, %v2501_v20 }
0x1166   : > { %v2517_v24 = vadd.f32 %v2878_v22, %v2509_v23 }
0x1168   : > { %3219 = vmatmul.mubr.msk.f32.vlgmr.msra.gmra.mxu0 %vm513_vm0, %v2517_v24 }
0x1228   : > { %v2598_v34 = vpop.f32.mrf.mxu0 }
0x1229   : > { %v2599_v35 = vadd.f32 %v2879_v33, %v2598_v34 }
0x122a   : > { %v3220_v53 = vpop.f32.mrf.mxu0 }
0x122b   : > { %v2603_v36 = vmul.f32 0.044715, %v2599_v35  ;;  %v2602_v47 = vmul.f32 0.5, %v2599_v35 }
0x122d   : > { %v2604_v37 = vmul.f32 %v2603_v36, %v2599_v35 }
0x122f   : > { %v2605_v38 = vmul.f32 %v2604_v37, %v2599_v35 }
0x1231   : > { %v2606_v39 = vadd.f32 %v2605_v38, %v2599_v35 }
0x1233   : > { %v2607_v40 = vmul.f32 0.7978846, %v2606_v39 }
0x1235   : > { %3305 = vtanh.f32 %v2607_v40 }
0x1242   : > { %v3306_v41 = vpop.eup %3305 }
0x1243   : > { %v2609_v42 = vadd.f32 1.0, %v3306_v41 }
0x1245   : > { %v2610_v21 = vmul.f32 %v2609_v42, %v2602_v47 }
0x1247   : > { %3238 = vmatmul.mubr.msk.f32.vlgmr.msra.gmra.mxu1 %vm2626_vm4, %v2610_v21 }
0x1307   : > { %v2696_v44 = vpop.f32.mrf.mxu1 }
0x1308   : > { %v2697_v45 = vadd.f32 %v2881_v43, %v2696_v44 }
0x1309   : > { %v3239_v46 = vpop.f32.mrf.mxu1 }
0x130a   : > { %v2700_v48 = vadd.f32 %v2697_v45, %v3843_v4 }
0x130c   : > { %2701 = vst.msk [vmem:[%s500_s24] sm:$0xff] %vm513_vm0, %v2700_v48 }
0x130d   : > { %3320 = shalt.err (!%p3317_p3)
}
0x130e   : > { %s3321_s26 = scalar_lea.hbm %s2714_s0, 128  ;;  %s3325_s24 = scalar_lea.hbm %s3959_s15, 256 }
0x130f   : > { %p3322_p4 = scmp.ne.s32.totalorder %s2714_s0, %s3321_s26  ;;  %p3326_p9 = scmp.lt.s32.totalorder %s2714_s0, %s3959_s15 }
0x1310   : > { %p3327_p10 = scmp.lt.s32.totalorder %s3325_s24, %s3321_s26 }
0x1311   : > { %p3323_p7 = pnand %p3322_p4, %p3490_p5 }
0x1312   : > { %p3328_p11 = por %p3327_p10, %p3326_p9 }
0x1313   : > { %p3324_p8 = pneg %p3323_p7 }
0x1315   : > { %p3329_p12 = pnand %p3328_p11, %p3324_p8 }
0x1317   : > { %3332 = shalt.err (!%p3329_p12)
}
0x1318   : > { %3240 = dma.vmem_to_hbm [thread:$0]  (%p3490_p5), %s2717_s27, 128, %s2714_s0, %s2703_s1  }
0x1319 PF: > { %p3246_p13 = scmp.ge.s32.totalorder %s3367_s21, 2  ;;  %s2728_s2 = sand.u32 1, %s3355_s18  }
0x131a   : > { %s2729_s22 = scalar_lea.sflag [#allocation3], %s2728_s2 }
0x131b   : > { %p3243_p0 = pnand %p3246_p13, %p3494_p6 }
0x131d   : > { %p3244_p1 = pneg %p3243_p0 }
0x131f   : > { %3350 = dma.done.wait (%p3244_p1), %s2729_s22, 128  }
0x1320   : > { %3352 = vsyncadd (%p3244_p1), %s2729_s22, 4294967168  ;;  %s3974_s21 = sld [smem:[#allocation6_spill]]  ;;  %s3977_s18 = smov %s3359_s19 }
0x1321   : > { %s3975_s23 = sld [smem:[#allocation5_spill]] }
0x1322   : > { %s3976_s20 = sld [smem:[#allocation7_spill]] }
0x1326   : > { %p25_p2 = scmp.ge.s32.totalorder %s3974_s21, 4  }
0x1327   : > { %s3978_s19 = smov %s3975_s23 }
0x1328   :  { %27 = sbr.rel (!%p25_p2) target bundleno = 7 (0x7), region = 130 }
0x132d   :  { %2734 = vsyncpa [#allocation3], 1 }
0x132e   :  { %2736 = vsyncpa [#allocation3 + $0x1], 1 }

</bundles_post_ra>
